<compile_context>
chip_gen: v5e
topology: v5e:2x2
jax: 0.10.0
libtpu: 0.0.40
codegen_flags: <defaults>
</compile_context>

<pallas_src>
import math
from functools import partial

import jax
import jax.numpy as jnp
from jax.experimental import pallas as pl
from jax.experimental.pallas import tpu as pltpu


# ----------------------------- tiling helpers -----------------------------

_MIB = 1 << 20


def _pick_tile(dim, target, align):
    """Largest multiple of `align` that divides `dim` and is <= target.
    Falls back to the full dim (always legal: block == array extent)."""
    if dim % align != 0:
        return dim
    t = min(target, dim)
    t -= t % align
    while t >= align:
        if dim % t == 0:
            return t
        t -= align
    return dim


def _vmem_limit(est_bytes):
    """Explicit scoped-VMEM limit from tile arithmetic.  At least the 32 MiB default
    (raises v5e's 16 MiB default), never above v7x's 64 MiB per-core physical budget.
    TODO(synk): per-generation tile sweep (v5e/v6e can afford tm up to 1024)."""
    return int(min(64 * _MIB, max(32 * _MIB, est_bytes * 3 // 2)))


# ----------------------------- Pallas kernels -----------------------------

def fused_linear(x, w, b, *, activation=None, residual=None,
                 ln_g=None, ln_b=None, ln_eps=1e-5, out_dtype=jnp.bfloat16,
                 tm_target=512, tn_target=1024, tk_target=2048):
    """y = act(x @ w + b) [+ residual, then LayerNorm] as a tiled bf16 MXU kernel.

    x / w / residual are expected to already be bf16 (weights pre-cast at init,
    activations kept bf16 between kernels); accumulation and the whole epilogue
    (GELU / residual add / LayerNorm) run in f32.  When K fits a single block the
    K grid axis and the VMEM accumulator are elided entirely.
    LN fusion requires the N tile to span the full feature dim.
    """
    M, K = x.shape
    K2, N = w.shape
    assert K == K2
    fuse_ln = ln_g is not None
    have_res = residual is not None

    x = x.astype(jnp.bfloat16)            # no-op when already bf16
    w = w.astype(jnp.bfloat16)            # no-op: weights pre-cast in params
    b2 = b.reshape(1, N).astype(jnp.float32)

    tm = _pick_tile(M, tm_target, 16)     # bf16 -> 16-row sublane packing
    tn = N if fuse_ln else _pick_tile(N, tn_target, 128)
    tk = _pick_tile(K, tk_target, 128)
    single_k = (tk == K)

    out_bytes = jnp.dtype(out_dtype).itemsize
    est = 2 * (tm * tk * 2 + tk * tn * 2 + tn * 4 + tm * tn * out_bytes)
    if have_res:
        est += 2 * tm * tn * 2
    if fuse_ln:
        est += 4 * tn * 4
    est += 2 * tm * tn * 4                # f32 accumulator / epilogue temporaries

    if single_k:
        grid = (M // tm, N // tn)
        x_spec = pl.BlockSpec((tm, K), lambda i, j: (i, 0))
        w_spec = pl.BlockSpec((K, tn), lambda i, j: (0, j))
        v_spec = pl.BlockSpec((1, tn), lambda i, j: (0, j))
        t_spec = pl.BlockSpec((tm, tn), lambda i, j: (i, j))
        semantics = ("parallel", "parallel")
        scratch = []
    else:
        grid = (M // tm, N // tn, K // tk)
        x_spec = pl.BlockSpec((tm, tk), lambda i, j, k: (i, k))
        w_spec = pl.BlockSpec((tk, tn), lambda i, j, k: (k, j))
        v_spec = pl.BlockSpec((1, tn), lambda i, j, k: (0, j))
        t_spec = pl.BlockSpec((tm, tn), lambda i, j, k: (i, j))
        semantics = ("parallel", "parallel", "arbitrary")
        scratch = [pltpu.VMEM((tm, tn), jnp.float32)]

    in_specs = [x_spec, w_spec, v_spec]
    inputs = [x, w, b2]
    if have_res:
        in_specs.append(t_spec)
        inputs.append(residual.astype(jnp.bfloat16))   # bf16 residual stream
    if fuse_ln:
        assert tn == N, "LN fusion needs the output tile to span the full feature dim"
        in_specs += [v_spec, v_spec]
        inputs += [ln_g.reshape(1, N).astype(jnp.float32),
                   ln_b.reshape(1, N).astype(jnp.float32)]

    def epilogue(y, r_ref, g_ref, bb_ref):
        if activation == "gelu":
            # RoBERTa uses exact (erf) GELU.
            y = 0.5 * y * (1.0 + jax.lax.erf(y * (1.0 / math.sqrt(2.0))))
        if have_res:
            y = y + r_ref[...].astype(jnp.float32)
        if fuse_ln:
            mu = jnp.mean(y, axis=-1, keepdims=True)
            var = jnp.mean((y - mu) ** 2, axis=-1, keepdims=True)
            y = (y - mu) * jax.lax.rsqrt(var + ln_eps) * g_ref[...] + bb_ref[...]
        return y

    def kernel(*refs):
        x_ref, w_ref, b_ref = refs[:3]
        pos = 3
        r_ref = g_ref = bb_ref = None
        if have_res:
            r_ref = refs[pos]
            pos += 1
        if fuse_ln:
            g_ref, bb_ref = refs[pos], refs[pos + 1]
            pos += 2

        if single_k:
            o_ref = refs[pos]
            y = jnp.dot(x_ref[...], w_ref[...],
                        preferred_element_type=jnp.float32) + b_ref[...]
            o_ref[...] = epilogue(y, r_ref, g_ref, bb_ref).astype(o_ref.dtype)
        else:
            o_ref, acc_ref = refs[pos], refs[pos + 1]

            @pl.when(pl.program_id(2) == 0)
            def _():
                acc_ref[...] = jnp.zeros_like(acc_ref)

            acc_ref[...] += jnp.dot(x_ref[...], w_ref[...],
                                    preferred_element_type=jnp.float32)

            @pl.when(pl.program_id(2) == pl.num_programs(2) - 1)
            def _():
                y = acc_ref[...] + b_ref[...]
                o_ref[...] = epilogue(y, r_ref, g_ref, bb_ref).astype(o_ref.dtype)

    return pl.pallas_call(
        kernel,
        out_shape=jax.ShapeDtypeStruct((M, N), out_dtype),
        grid=grid,
        in_specs=in_specs,
        out_specs=t_spec,
        scratch_shapes=scratch,
        compiler_params=pltpu.CompilerParams(
            dimension_semantics=semantics,
            vmem_limit_bytes=_vmem_limit(est)),
    )(*inputs)


def layernorm(x, gamma, beta, eps=1e-5, out_dtype=jnp.bfloat16):
    """Row-tiled LayerNorm (f32 math, bf16 out).  Pure mem-bound -> 512-row tiles."""
    M, H = x.shape
    tm = _pick_tile(M, 512, 8)
    g2 = gamma.reshape(1, H).astype(jnp.float32)
    b2 = beta.reshape(1, H).astype(jnp.float32)

    def kernel(x_ref, g_ref, b_ref, o_ref):
        v = x_ref[...].astype(jnp.float32)
        mu = jnp.mean(v, axis=-1, keepdims=True)
        var = jnp.mean((v - mu) ** 2, axis=-1, keepdims=True)
        o_ref[...] = ((v - mu) * jax.lax.rsqrt(var + eps) * g_ref[...]
                      + b_ref[...]).astype(o_ref.dtype)

    return pl.pallas_call(
        kernel,
        out_shape=jax.ShapeDtypeStruct((M, H), out_dtype),
        grid=(M // tm,),
        in_specs=[pl.BlockSpec((tm, H), lambda i: (i, 0)),
                  pl.BlockSpec((1, H), lambda i: (0, 0)),
                  pl.BlockSpec((1, H), lambda i: (0, 0))],
        out_specs=pl.BlockSpec((tm, H), lambda i: (i, 0)),
        compiler_params=pltpu.CompilerParams(dimension_semantics=("parallel",)),
    )(x, g2, b2)


def attention(qkv, bias, *, B, S, H, NH, scale):
    """Multi-head self-attention consuming the fused (B*S, 3H) QKV slab directly.

    Grid is (batch, q_block) -- both parallel, so >= 2 grid steps even at B=1.
    The (S, 3H) kv-context block's index_map ignores the q_block axis, so it stays
    resident in VMEM across q blocks (no re-DMA).  Heads are an unrolled in-kernel
    loop with *static* lane slices: live scores are only (tq, S) per head (never an
    (NH, S, S) slab), and the output is written token-major into a lane-dense
    (tq, H) block.  The p @ v matmul contracts over the full kv length, so at real
    sequence lengths (>=256) it saturates the 256-wide MXU.
    """
    HD = H // NH
    C3 = 3 * H
    qkv3 = qkv.reshape(B, S, C3)           # free reshape -- no transpose / slicing
    TQ = _pick_tile(S, 128, 8)
    NQ = S // TQ

    def kernel(qkv_ref, bias_ref, o_ref):
        # qkv_ref: (S, 3H) bf16   bias_ref: (1, S) f32   o_ref: (TQ, H) bf16
        qi = pl.program_id(1)
        row0 = pl.multiple_of(qi * TQ, TQ)
        bias_row = bias_ref[...]
        for h in range(NH):                                           # static unroll
            q = qkv_ref[pl.ds(row0, TQ), h * HD:(h + 1) * HD]          # (TQ, HD)
            k = qkv_ref[:, H + h * HD:H + (h + 1) * HD]                # (S,  HD)
            v = qkv_ref[:, 2 * H + h * HD:2 * H + (h + 1) * HD]        # (S,  HD)
            s = jnp.einsum('qd,kd->qk', q, k,
                           preferred_element_type=jnp.float32) * scale
            s = s + bias_row                                           # (TQ, S)
            m = jnp.max(s, axis=-1, keepdims=True)
            e = jnp.exp(s - m)
            denom = jnp.sum(e, axis=-1, keepdims=True)
            p = e * pl.reciprocal(denom, approx=True)                  # EUP, not VPU div
            ctx = jnp.dot(p.astype(qkv_ref.dtype), v,
                          preferred_element_type=jnp.float32)          # (TQ, HD)
            o_ref[:, h * HD:(h + 1) * HD] = ctx.astype(o_ref.dtype)

    # TODO(synk): for S >~ 2K, add a kv grid axis ("arbitrary") with online-softmax
    # m/l/acc VMEM scratch (flash) so the per-head (TQ, S) score block stays bounded.
    out = pl.pallas_call(
        kernel,
        out_shape=jax.ShapeDtypeStruct((B, S, H), jnp.bfloat16),
        grid=(B, NQ),
        in_specs=[pl.BlockSpec((None, S, C3), lambda b, q: (b, 0, 0)),
                  pl.BlockSpec((None, 1, S), lambda b, q: (b, 0, 0))],
        out_specs=pl.BlockSpec((None, TQ, H), lambda b, q: (b, q, 0)),
        compiler_params=pltpu.CompilerParams(
            dimension_semantics=("parallel", "parallel")),
    )(qkv3, bias)
    return out.reshape(B * S, H)           # free reshape back to token-major 2-D


# --------------------------- Model (forward pass) ---------------------------

class Config:
    vocab_size = 100
    hidden = 32          # scaled down from 1024 (roberta-large)
    n_layers = 2         # scaled down from 24
    n_heads = 4          # scaled down from 16
    intermediate = 64    # scaled down from 4096
    max_pos = 40
    pad_token_id = 1
    num_labels = 5
    ln_eps = 1e-5


def init_params(key, cfg):
    std = 0.02
    keys = iter(jax.random.split(key, 8 + cfg.n_layers * 8))

    def nrm(shape, dtype=jnp.float32):
        return (std * jax.random.normal(next(keys), shape)).astype(dtype)

    H = cfg.hidden
    NL = cfg.num_labels
    NPAD = max(128, ((NL + 127) // 128) * 128)
    proj_w = nrm((H, NL))

    p = {
        "word_emb": nrm((cfg.vocab_size, H)),
        "pos_emb": nrm((cfg.max_pos, H)),
        "type_emb": nrm((1, H)),
        "emb_ln_g": jnp.ones((H,), jnp.float32),
        "emb_ln_b": jnp.zeros((H,), jnp.float32),
        "layers": [],
        # classifier head: padded to 128 lanes and pre-cast to bf16 once (hoisted
        # out of the forward pass)
        "proj_w_pad": jnp.zeros((H, NPAD), jnp.float32)
                         .at[:, :NL].set(proj_w).astype(jnp.bfloat16),
        "proj_b_pad": jnp.zeros((NPAD,), jnp.float32),
    }
    for _ in range(cfg.n_layers):
        p["layers"].append({
            # matmul weights stored bf16 once at init -> no per-call cast kernels
            "qkv_w": nrm((H, 3 * H), jnp.bfloat16),       # fused Q/K/V projection
            "qkv_b": jnp.zeros((3 * H,), jnp.float32),
            "o_w": nrm((H, H), jnp.bfloat16),
            "o_b": jnp.zeros((H,), jnp.float32),
            "attn_ln_g": jnp.ones((H,), jnp.float32),
            "attn_ln_b": jnp.zeros((H,), jnp.float32),
            "ffn_in_w": nrm((H, cfg.intermediate), jnp.bfloat16),
            "ffn_in_b": jnp.zeros((cfg.intermediate,), jnp.float32),
            "ffn_out_w": nrm((cfg.intermediate, H), jnp.bfloat16),
            "ffn_out_b": jnp.zeros((H,), jnp.float32),
            "ffn_ln_g": jnp.ones((H,), jnp.float32),
            "ffn_ln_b": jnp.zeros((H,), jnp.float32),
        })
    return p


def bert_class_forward(params, ids, mask, cfg):
    B, S = ids.shape
    H, NH = cfg.hidden, cfg.n_heads
    HD = H // NH
    M = B * S

    # ---- embeddings (gathers = XLA glue; LN in Pallas, bf16 out) ----
    maskf = mask.astype(jnp.float32)
    # RoBERTa position ids: cumsum over non-pad tokens, offset by padding_idx.
    incremental = jnp.cumsum(mask, axis=1) * mask
    pos_ids = incremental + cfg.pad_token_id
    emb = (params["word_emb"][ids]
           + params["pos_emb"][pos_ids]
           + params["type_emb"][jnp.zeros_like(ids)])
    hs = layernorm(emb.reshape(M, H), params["emb_ln_g"], params["emb_ln_b"],
                   cfg.ln_eps)                                        # (B*S, H) bf16

    # attention mask bias: (B, 1, S) -- deduplicated (not per-head). Fully padded
    # rows would get a uniform softmax; not reachable since position 0 is unmasked.
    bias = ((1.0 - maskf) * -1e9)[:, None, :]
    scale = 1.0 / math.sqrt(HD)

    for lyr in params["layers"]:
        # ---- self-attention: fused QKV matmul -> attention consumes slab directly ----
        qkv = fused_linear(hs, lyr["qkv_w"], lyr["qkv_b"])            # (M, 3H) bf16
        ctx = attention(qkv, bias, B=B, S=S, H=H, NH=NH, scale=scale)  # (M, H) bf16
        # out-proj with bias + residual + LayerNorm fused into the matmul epilogue
        hs = fused_linear(ctx, lyr["o_w"], lyr["o_b"], residual=hs,
                          ln_g=lyr["attn_ln_g"], ln_b=lyr["attn_ln_b"],
                          ln_eps=cfg.ln_eps)                           # (M, H) bf16

        # ---- feed-forward ----
        inter = fused_linear(hs, lyr["ffn_in_w"], lyr["ffn_in_b"],
                             activation="gelu")                        # (M, I) bf16
        hs = fused_linear(inter, lyr["ffn_out_w"], lyr["ffn_out_b"], residual=hs,
                          ln_g=lyr["ffn_ln_g"], ln_b=lyr["ffn_ln_b"],
                          ln_eps=cfg.ln_eps)                           # (M, H) bf16

    # ---- last_hidden_state[:, 0, :] -> project_down (pre-padded weights) ----
    cls = hs.reshape(B, S, H)[:, 0, :]                                 # (B, H) bf16
    BP = ((B + 15) // 16) * 16                                         # full sublane tile
    cls_p = jnp.zeros((BP, H), jnp.bfloat16).at[:B].set(cls)
    logits = fused_linear(cls_p, params["proj_w_pad"], params["proj_b_pad"],
                          out_dtype=jnp.float32)
    return logits[:B, :cfg.num_labels]


# ----------------------------------- main -----------------------------------

if __name__ == "__main__":
    cfg = Config()
    key = jax.random.PRNGKey(0)
    pkey, ikey = jax.random.split(key)

    params = init_params(pkey, cfg)

    B, S = 2, 8
    ids = jax.random.randint(ikey, (B, S), 2, cfg.vocab_size, dtype=jnp.int32)
    mask = jnp.ones((B, S), dtype=jnp.int32)
    mask = mask.at[1, -2:].set(0)        # exercise the attention mask path
    ids = jnp.where(mask == 0, cfg.pad_token_id, ids)

    fwd = jax.jit(partial(bert_class_forward, cfg=cfg))
    logits = fwd(params, ids, mask)
    jax.block_until_ready(logits)
    assert logits.shape == (B, cfg.num_labels)
    assert bool(jnp.all(jnp.isfinite(logits)))
    print("KERNEL_OK")
</pallas_src>

<mosaic_0001>
module attributes {stable_mosaic.version = 11 : i64} {
  func.func @kernel(%arg0: i32, %arg1: memref<16x32xf32, #tpu.memory_space<vmem>>, %arg2: memref<1x32xf32, #tpu.memory_space<vmem>>, %arg3: memref<1x32xf32, #tpu.memory_space<vmem>>, %arg4: memref<16x32xbf16, #tpu.memory_space<vmem>>) attributes {dimension_semantics = [#tpu.dimension_semantics<parallel>], iteration_bounds = array<i64: 1>, scalar_prefetch = 0 : i64, scratch_operands = 0 : i64, tpu.core_type = #tpu.core_type<tc>, window_params = [{transform_indices = @transform_0, window_bounds = array<i64: 16, 32>}, {pipeline_mode = #tpu.pipeline_mode<synchronous>, transform_indices = @transform_1, window_bounds = array<i64: 1, 32>}, {pipeline_mode = #tpu.pipeline_mode<synchronous>, transform_indices = @transform_2, window_bounds = array<i64: 1, 32>}, {transform_indices = @transform_3, window_bounds = array<i64: 16, 32>}]} {
    %c0 = arith.constant 0 : index
    %c0_0 = arith.constant 0 : index
    %0 = vector.load %arg1[%c0, %c0_0] : memref<16x32xf32, #tpu.memory_space<vmem>>, vector<16x32xf32>
    %cst = arith.constant dense<0.000000e+00> : vector<16xf32>
    %1 = vector.multi_reduction <add>, %0, %cst [1] : vector<16x32xf32> to vector<16xf32>
    %2 = vector.shape_cast %1 : vector<16xf32> to vector<16x1xf32>
    %cst_1 = arith.constant 3.200000e+01 : f32
    %3 = vector.broadcast %cst_1 : f32 to vector<16x1xf32>
    %4 = arith.divf %2, %3 : vector<16x1xf32>
    %5 = vector.broadcast %4 : vector<16x1xf32> to vector<16x32xf32>
    %6 = arith.subf %0, %5 : vector<16x32xf32>
    %7 = arith.mulf %6, %6 : vector<16x32xf32>
    %cst_2 = arith.constant dense<0.000000e+00> : vector<16xf32>
    %8 = vector.multi_reduction <add>, %7, %cst_2 [1] : vector<16x32xf32> to vector<16xf32>
    %9 = vector.shape_cast %8 : vector<16xf32> to vector<16x1xf32>
    %cst_3 = arith.constant 3.200000e+01 : f32
    %10 = vector.broadcast %cst_3 : f32 to vector<16x1xf32>
    %11 = arith.divf %9, %10 : vector<16x1xf32>
    %12 = vector.broadcast %4 : vector<16x1xf32> to vector<16x32xf32>
    %13 = arith.subf %0, %12 : vector<16x32xf32>
    %cst_4 = arith.constant 9.99999974E-6 : f32
    %14 = vector.broadcast %cst_4 : f32 to vector<16x1xf32>
    %15 = arith.addf %11, %14 : vector<16x1xf32>
    %16 = math.rsqrt %15 : vector<16x1xf32>
    %17 = vector.broadcast %16 : vector<16x1xf32> to vector<16x32xf32>
    %18 = arith.mulf %13, %17 : vector<16x32xf32>
    %c0_5 = arith.constant 0 : index
    %c0_6 = arith.constant 0 : index
    %19 = vector.load %arg2[%c0_5, %c0_6] : memref<1x32xf32, #tpu.memory_space<vmem>>, vector<1x32xf32>
    %20 = vector.broadcast %19 : vector<1x32xf32> to vector<16x32xf32>
    %21 = arith.mulf %18, %20 : vector<16x32xf32>
    %c0_7 = arith.constant 0 : index
    %c0_8 = arith.constant 0 : index
    %22 = vector.load %arg3[%c0_7, %c0_8] : memref<1x32xf32, #tpu.memory_space<vmem>>, vector<1x32xf32>
    %23 = vector.broadcast %22 : vector<1x32xf32> to vector<16x32xf32>
    %24 = arith.addf %21, %23 : vector<16x32xf32>
    %25 = arith.truncf %24 : vector<16x32xf32> to vector<16x32xbf16>
    %c0_9 = arith.constant 0 : index
    %c0_10 = arith.constant 0 : index
    %26 = vector.load %arg4[%c0_9, %c0_10] : memref<16x32xbf16, #tpu.memory_space<vmem>>, vector<16x32xbf16>
    tpu.vector_store %arg4[%c0_9, %c0_10], %25 {strides = array<i32>} : memref<16x32xbf16, #tpu.memory_space<vmem>>, vector<16x32xbf16>,
    return
  }
  func.func @transform_0(%arg0: i32) -> (i32, i32) {
    %c0_i32 = arith.constant 0 : i32
    %c0_i32_0 = arith.constant 0 : i32
    return %arg0, %c0_i32 : i32, i32
  }
  func.func @transform_1(%arg0: i32) -> (i32, i32) {
    %c0_i32 = arith.constant 0 : i32
    %c0_i32_0 = arith.constant 0 : i32
    %c0_i32_1 = arith.constant 0 : i32
    return %c0_i32, %c0_i32_0 : i32, i32
  }
  func.func @transform_2(%arg0: i32) -> (i32, i32) {
    %c0_i32 = arith.constant 0 : i32
    %c0_i32_0 = arith.constant 0 : i32
    %c0_i32_1 = arith.constant 0 : i32
    return %c0_i32, %c0_i32_0 : i32, i32
  }
  func.func @transform_3(%arg0: i32) -> (i32, i32) {
    %c0_i32 = arith.constant 0 : i32
    %c0_i32_0 = arith.constant 0 : i32
    return %arg0, %c0_i32 : i32, i32
  }
}

module attributes {stable_mosaic.version = 11 : i64} {
  func.func @kernel(%arg0: i32, %arg1: i32, %arg2: memref<16x32xbf16, #tpu.memory_space<vmem>>, %arg3: memref<32x96xbf16, #tpu.memory_space<vmem>>, %arg4: memref<1x96xf32, #tpu.memory_space<vmem>>, %arg5: memref<16x96xbf16, #tpu.memory_space<vmem>>) attributes {dimension_semantics = [#tpu.dimension_semantics<parallel>, #tpu.dimension_semantics<parallel>], iteration_bounds = array<i64: 1, 1>, scalar_prefetch = 0 : i64, scratch_operands = 0 : i64, tpu.core_type = #tpu.core_type<tc>, window_params = [{transform_indices = @transform_0, window_bounds = array<i64: 16, 32>}, {transform_indices = @transform_1, window_bounds = array<i64: 32, 96>}, {transform_indices = @transform_2, window_bounds = array<i64: 1, 96>}, {transform_indices = @transform_3, window_bounds = array<i64: 16, 96>}]} {
    %c0 = arith.constant 0 : index
    %c0_0 = arith.constant 0 : index
    %0 = vector.load %arg2[%c0, %c0_0] : memref<16x32xbf16, #tpu.memory_space<vmem>>, vector<16x32xbf16>
    %c0_1 = arith.constant 0 : index
    %c0_2 = arith.constant 0 : index
    %1 = vector.load %arg3[%c0_1, %c0_2] : memref<32x96xbf16, #tpu.memory_space<vmem>>, vector<32x96xbf16>
    %cst = arith.constant dense<0.000000e+00> : vector<16x96xf32>
    %2 = tpu.matmul %0, %1, %cst {dimension_numbers = #tpu.dot_dimension_numbers<[1], [0], [0], [1], [0, 0, 1, 1], [], []>} : vector<16x32xbf16>, vector<32x96xbf16>, vector<16x96xf32> -> vector<16x96xf32>
    %c0_3 = arith.constant 0 : index
    %c0_4 = arith.constant 0 : index
    %3 = vector.load %arg4[%c0_3, %c0_4] : memref<1x96xf32, #tpu.memory_space<vmem>>, vector<1x96xf32>
    %4 = vector.broadcast %3 : vector<1x96xf32> to vector<16x96xf32>
    %5 = arith.addf %2, %4 : vector<16x96xf32>
    %6 = arith.truncf %5 : vector<16x96xf32> to vector<16x96xbf16>
    %c0_5 = arith.constant 0 : index
    %c0_6 = arith.constant 0 : index
    %7 = vector.load %arg5[%c0_5, %c0_6] : memref<16x96xbf16, #tpu.memory_space<vmem>>, vector<16x96xbf16>
    tpu.vector_store %arg5[%c0_5, %c0_6], %6 {strides = array<i32>} : memref<16x96xbf16, #tpu.memory_space<vmem>>, vector<16x96xbf16>,
    return
  }
  func.func @transform_0(%arg0: i32, %arg1: i32) -> (i32, i32) {
    %c0_i32 = arith.constant 0 : i32
    %c0_i32_0 = arith.constant 0 : i32
    return %arg0, %c0_i32 : i32, i32
  }
  func.func @transform_1(%arg0: i32, %arg1: i32) -> (i32, i32) {
    %c0_i32 = arith.constant 0 : i32
    %c0_i32_0 = arith.constant 0 : i32
    return %c0_i32, %arg1 : i32, i32
  }
  func.func @transform_2(%arg0: i32, %arg1: i32) -> (i32, i32) {
    %c0_i32 = arith.constant 0 : i32
    %c0_i32_0 = arith.constant 0 : i32
    return %c0_i32, %arg1 : i32, i32
  }
  func.func @transform_3(%arg0: i32, %arg1: i32) -> (i32, i32) {
    %c0_i32 = arith.constant 0 : i32
    return %arg0, %arg1 : i32, i32
  }
}

module attributes {stable_mosaic.version = 11 : i64} {
  func.func @kernel(%arg0: i32, %arg1: i32, %arg2: memref<1x8x96xbf16, #tpu.memory_space<vmem>>, %arg3: memref<1x1x8xf32, #tpu.memory_space<vmem>>, %arg4: memref<1x8x32xbf16, #tpu.memory_space<vmem>>) attributes {dimension_semantics = [#tpu.dimension_semantics<parallel>, #tpu.dimension_semantics<parallel>], iteration_bounds = array<i64: 2, 1>, scalar_prefetch = 0 : i64, scratch_operands = 0 : i64, tpu.core_type = #tpu.core_type<tc>, window_params = [{transform_indices = @transform_0, window_bounds = array<i64: 1, 8, 96>}, {transform_indices = @transform_1, window_bounds = array<i64: 1, 1, 8>}, {transform_indices = @transform_2, window_bounds = array<i64: 1, 8, 32>}]} {
    %c8_i32 = arith.constant 8 : i32
    %0 = arith.muli %arg1, %c8_i32 : i32
    %1 = tpu.assume_multiple %0, 8 : i32
    %c0 = arith.constant 0 : index
    %c0_0 = arith.constant 0 : index
    %c0_1 = arith.constant 0 : index
    %2 = vector.load %arg3[%c0, %c0_0, %c0_1] : memref<1x1x8xf32, #tpu.memory_space<vmem>>, vector<1x1x8xf32>
    %3 = vector.shape_cast %2 : vector<1x1x8xf32> to vector<1x8xf32>
    %c0_2 = arith.constant 0 : index
    %4 = arith.index_cast %1 : i32 to index
    %c0_3 = arith.constant 0 : index
    %5 = vector.load %arg2[%c0_2, %4, %c0_3] : memref<1x8x96xbf16, #tpu.memory_space<vmem>>, vector<1x8x8xbf16>
    %6 = vector.shape_cast %5 : vector<1x8x8xbf16> to vector<8x8xbf16>
    %c0_4 = arith.constant 0 : index
    %c0_5 = arith.constant 0 : index
    %c32 = arith.constant 32 : index
    %7 = vector.load %arg2[%c0_4, %c0_5, %c32] : memref<1x8x96xbf16, #tpu.memory_space<vmem>>, vector<1x8x8xbf16>
    %8 = vector.shape_cast %7 : vector<1x8x8xbf16> to vector<8x8xbf16>
    %c0_6 = arith.constant 0 : index
    %c0_7 = arith.constant 0 : index
    %c64 = arith.constant 64 : index
    %9 = vector.load %arg2[%c0_6, %c0_7, %c64] : memref<1x8x96xbf16, #tpu.memory_space<vmem>>, vector<1x8x8xbf16>
    %10 = vector.shape_cast %9 : vector<1x8x8xbf16> to vector<8x8xbf16>
    "tpu.trace_start"() <{level = 10 : i32, message = "qd,kd->qk"}> : () -> ()
    %cst = arith.constant dense<0.000000e+00> : vector<8x8xf32>
    %11 = tpu.matmul %6, %8, %cst {dimension_numbers = #tpu.dot_dimension_numbers<[1], [1], [0], [0], [0, 0, 1, 0], [], []>} : vector<8x8xbf16>, vector<8x8xbf16>, vector<8x8xf32> -> vector<8x8xf32>
    "tpu.trace_stop"() : () -> ()
    %cst_8 = arith.constant 0.353553385 : f32
    %12 = vector.broadcast %cst_8 : f32 to vector<8x8xf32>
    %13 = arith.mulf %11, %12 : vector<8x8xf32>
    %14 = vector.broadcast %3 : vector<1x8xf32> to vector<8x8xf32>
    %15 = arith.addf %13, %14 : vector<8x8xf32>
    %cst_9 = arith.constant dense<0xFF800000> : vector<8xf32>
    %16 = vector.multi_reduction <maximumf>, %15, %cst_9 [1] : vector<8x8xf32> to vector<8xf32>
    %17 = vector.shape_cast %16 : vector<8xf32> to vector<8x1xf32>
    %18 = vector.broadcast %17 : vector<8x1xf32> to vector<8x8xf32>
    %19 = arith.subf %15, %18 : vector<8x8xf32>
    %20 = math.exp %19 : vector<8x8xf32>
    %cst_10 = arith.constant dense<0.000000e+00> : vector<8xf32>
    %21 = vector.multi_reduction <add>, %20, %cst_10 [1] : vector<8x8xf32> to vector<8xf32>
    %22 = vector.shape_cast %21 : vector<8xf32> to vector<8x1xf32>
    %23 = tpu.reciprocal %22 {approx = true} : vector<8x1xf32> -> vector<8x1xf32>
    %24 = vector.broadcast %23 : vector<8x1xf32> to vector<8x8xf32>
    %25 = arith.mulf %20, %24 : vector<8x8xf32>
    %26 = arith.truncf %25 : vector<8x8xf32> to vector<8x8xbf16>
    %cst_11 = arith.constant dense<0.000000e+00> : vector<8x8xf32>
    %27 = tpu.matmul %26, %10, %cst_11 {dimension_numbers = #tpu.dot_dimension_numbers<[1], [0], [0], [1], [0, 0, 1, 1], [], []>} : vector<8x8xbf16>, vector<8x8xbf16>, vector<8x8xf32> -> vector<8x8xf32>
    %28 = arith.truncf %27 : vector<8x8xf32> to vector<8x8xbf16>
    %c0_12 = arith.constant 0 : index
    %c0_13 = arith.constant 0 : index
    %c0_14 = arith.constant 0 : index
    %29 = vector.load %arg4[%c0_12, %c0_13, %c0_14] : memref<1x8x32xbf16, #tpu.memory_space<vmem>>, vector<1x8x8xbf16>
    %30 = vector.shape_cast %29 : vector<1x8x8xbf16> to vector<8x8xbf16>
    %31 = vector.shape_cast %28 : vector<8x8xbf16> to vector<1x8x8xbf16>
    tpu.vector_store %arg4[%c0_12, %c0_13, %c0_14], %31 {strides = array<i32>} : memref<1x8x32xbf16, #tpu.memory_space<vmem>>, vector<1x8x8xbf16>,
    %c0_15 = arith.constant 0 : index
    %32 = arith.index_cast %1 : i32 to index
    %c8 = arith.constant 8 : index
    %33 = vector.load %arg2[%c0_15, %32, %c8] : memref<1x8x96xbf16, #tpu.memory_space<vmem>>, vector<1x8x8xbf16>
    %34 = vector.shape_cast %33 : vector<1x8x8xbf16> to vector<8x8xbf16>
    %c0_16 = arith.constant 0 : index
    %c0_17 = arith.constant 0 : index
    %c40 = arith.constant 40 : index
    %35 = vector.load %arg2[%c0_16, %c0_17, %c40] : memref<1x8x96xbf16, #tpu.memory_space<vmem>>, vector<1x8x8xbf16>
    %36 = vector.shape_cast %35 : vector<1x8x8xbf16> to vector<8x8xbf16>
    %c0_18 = arith.constant 0 : index
    %c0_19 = arith.constant 0 : index
    %c72 = arith.constant 72 : index
    %37 = vector.load %arg2[%c0_18, %c0_19, %c72] : memref<1x8x96xbf16, #tpu.memory_space<vmem>>, vector<1x8x8xbf16>
    %38 = vector.shape_cast %37 : vector<1x8x8xbf16> to vector<8x8xbf16>
    "tpu.trace_start"() <{level = 10 : i32, message = "qd,kd->qk"}> : () -> ()
    %cst_20 = arith.constant dense<0.000000e+00> : vector<8x8xf32>
    %39 = tpu.matmul %34, %36, %cst_20 {dimension_numbers = #tpu.dot_dimension_numbers<[1], [1], [0], [0], [0, 0, 1, 0], [], []>} : vector<8x8xbf16>, vector<8x8xbf16>, vector<8x8xf32> -> vector<8x8xf32>
    "tpu.trace_stop"() : () -> ()
    %cst_21 = arith.constant 0.353553385 : f32
    %40 = vector.broadcast %cst_21 : f32 to vector<8x8xf32>
    %41 = arith.mulf %39, %40 : vector<8x8xf32>
    %42 = vector.broadcast %3 : vector<1x8xf32> to vector<8x8xf32>
    %43 = arith.addf %41, %42 : vector<8x8xf32>
    %cst_22 = arith.constant dense<0xFF800000> : vector<8xf32>
    %44 = vector.multi_reduction <maximumf>, %43, %cst_22 [1] : vector<8x8xf32> to vector<8xf32>
    %45 = vector.shape_cast %44 : vector<8xf32> to vector<8x1xf32>
    %46 = vector.broadcast %45 : vector<8x1xf32> to vector<8x8xf32>
    %47 = arith.subf %43, %46 : vector<8x8xf32>
    %48 = math.exp %47 : vector<8x8xf32>
    %cst_23 = arith.constant dense<0.000000e+00> : vector<8xf32>
    %49 = vector.multi_reduction <add>, %48, %cst_23 [1] : vector<8x8xf32> to vector<8xf32>
    %50 = vector.shape_cast %49 : vector<8xf32> to vector<8x1xf32>
    %51 = tpu.reciprocal %50 {approx = true} : vector<8x1xf32> -> vector<8x1xf32>
    %52 = vector.broadcast %51 : vector<8x1xf32> to vector<8x8xf32>
    %53 = arith.mulf %48, %52 : vector<8x8xf32>
    %54 = arith.truncf %53 : vector<8x8xf32> to vector<8x8xbf16>
    %cst_24 = arith.constant dense<0.000000e+00> : vector<8x8xf32>
    %55 = tpu.matmul %54, %38, %cst_24 {dimension_numbers = #tpu.dot_dimension_numbers<[1], [0], [0], [1], [0, 0, 1, 1], [], []>} : vector<8x8xbf16>, vector<8x8xbf16>, vector<8x8xf32> -> vector<8x8xf32>
    %56 = arith.truncf %55 : vector<8x8xf32> to vector<8x8xbf16>
    %c0_25 = arith.constant 0 : index
    %c0_26 = arith.constant 0 : index
    %c8_27 = arith.constant 8 : index
    %57 = vector.load %arg4[%c0_25, %c0_26, %c8_27] : memref<1x8x32xbf16, #tpu.memory_space<vmem>>, vector<1x8x8xbf16>
    %58 = vector.shape_cast %57 : vector<1x8x8xbf16> to vector<8x8xbf16>
    %59 = vector.shape_cast %56 : vector<8x8xbf16> to vector<1x8x8xbf16>
    tpu.vector_store %arg4[%c0_25, %c0_26, %c8_27], %59 {strides = array<i32>} : memref<1x8x32xbf16, #tpu.memory_space<vmem>>, vector<1x8x8xbf16>,
    %c0_28 = arith.constant 0 : index
    %60 = arith.index_cast %1 : i32 to index
    %c16 = arith.constant 16 : index
    %61 = vector.load %arg2[%c0_28, %60, %c16] : memref<1x8x96xbf16, #tpu.memory_space<vmem>>, vector<1x8x8xbf16>
    %62 = vector.shape_cast %61 : vector<1x8x8xbf16> to vector<8x8xbf16>
    %c0_29 = arith.constant 0 : index
    %c0_30 = arith.constant 0 : index
    %c48 = arith.constant 48 : index
    %63 = vector.load %arg2[%c0_29, %c0_30, %c48] : memref<1x8x96xbf16, #tpu.memory_space<vmem>>, vector<1x8x8xbf16>
    %64 = vector.shape_cast %63 : vector<1x8x8xbf16> to vector<8x8xbf16>
    %c0_31 = arith.constant 0 : index
    %c0_32 = arith.constant 0 : index
    %c80 = arith.constant 80 : index
    %65 = vector.load %arg2[%c0_31, %c0_32, %c80] : memref<1x8x96xbf16, #tpu.memory_space<vmem>>, vector<1x8x8xbf16>
    %66 = vector.shape_cast %65 : vector<1x8x8xbf16> to vector<8x8xbf16>
    "tpu.trace_start"() <{level = 10 : i32, message = "qd,kd->qk"}> : () -> ()
    %cst_33 = arith.constant dense<0.000000e+00> : vector<8x8xf32>
    %67 = tpu.matmul %62, %64, %cst_33 {dimension_numbers = #tpu.dot_dimension_numbers<[1], [1], [0], [0], [0, 0, 1, 0], [], []>} : vector<8x8xbf16>, vector<8x8xbf16>, vector<8x8xf32> -> vector<8x8xf32>
    "tpu.trace_stop"() : () -> ()
    %cst_34 = arith.constant 0.353553385 : f32
    %68 = vector.broadcast %cst_34 : f32 to vector<8x8xf32>
    %69 = arith.mulf %67, %68 : vector<8x8xf32>
    %70 = vector.broadcast %3 : vector<1x8xf32> to vector<8x8xf32>
    %71 = arith.addf %69, %70 : vector<8x8xf32>
    %cst_35 = arith.constant dense<0xFF800000> : vector<8xf32>
    %72 = vector.multi_reduction <maximumf>, %71, %cst_35 [1] : vector<8x8xf32> to vector<8xf32>
    %73 = vector.shape_cast %72 : vector<8xf32> to vector<8x1xf32>
    %74 = vector.broadcast %73 : vector<8x1xf32> to vector<8x8xf32>
    %75 = arith.subf %71, %74 : vector<8x8xf32>
    %76 = math.exp %75 : vector<8x8xf32>
    %cst_36 = arith.constant dense<0.000000e+00> : vector<8xf32>
    %77 = vector.multi_reduction <add>, %76, %cst_36 [1] : vector<8x8xf32> to vector<8xf32>
    %78 = vector.shape_cast %77 : vector<8xf32> to vector<8x1xf32>
    %79 = tpu.reciprocal %78 {approx = true} : vector<8x1xf32> -> vector<8x1xf32>
    %80 = vector.broadcast %79 : vector<8x1xf32> to vector<8x8xf32>
    %81 = arith.mulf %76, %80 : vector<8x8xf32>
    %82 = arith.truncf %81 : vector<8x8xf32> to vector<8x8xbf16>
    %cst_37 = arith.constant dense<0.000000e+00> : vector<8x8xf32>
    %83 = tpu.matmul %82, %66, %cst_37 {dimension_numbers = #tpu.dot_dimension_numbers<[1], [0], [0], [1], [0, 0, 1, 1], [], []>} : vector<8x8xbf16>, vector<8x8xbf16>, vector<8x8xf32> -> vector<8x8xf32>
    %84 = arith.truncf %83 : vector<8x8xf32> to vector<8x8xbf16>
    %c0_38 = arith.constant 0 : index
    %c0_39 = arith.constant 0 : index
    %c16_40 = arith.constant 16 : index
    %85 = vector.load %arg4[%c0_38, %c0_39, %c16_40] : memref<1x8x32xbf16, #tpu.memory_space<vmem>>, vector<1x8x8xbf16>
    %86 = vector.shape_cast %85 : vector<1x8x8xbf16> to vector<8x8xbf16>
    %87 = vector.shape_cast %84 : vector<8x8xbf16> to vector<1x8x8xbf16>
    tpu.vector_store %arg4[%c0_38, %c0_39, %c16_40], %87 {strides = array<i32>} : memref<1x8x32xbf16, #tpu.memory_space<vmem>>, vector<1x8x8xbf16>,
    %c0_41 = arith.constant 0 : index
    %88 = arith.index_cast %1 : i32 to index
    %c24 = arith.constant 24 : index
    %89 = vector.load %arg2[%c0_41, %88, %c24] : memref<1x8x96xbf16, #tpu.memory_space<vmem>>, vector<1x8x8xbf16>
    %90 = vector.shape_cast %89 : vector<1x8x8xbf16> to vector<8x8xbf16>
    %c0_42 = arith.constant 0 : index
    %c0_43 = arith.constant 0 : index
    %c56 = arith.constant 56 : index
    %91 = vector.load %arg2[%c0_42, %c0_43, %c56] : memref<1x8x96xbf16, #tpu.memory_space<vmem>>, vector<1x8x8xbf16>
    %92 = vector.shape_cast %91 : vector<1x8x8xbf16> to vector<8x8xbf16>
    %c0_44 = arith.constant 0 : index
    %c0_45 = arith.constant 0 : index
    %c88 = arith.constant 88 : index
    %93 = vector.load %arg2[%c0_44, %c0_45, %c88] : memref<1x8x96xbf16, #tpu.memory_space<vmem>>, vector<1x8x8xbf16>
    %94 = vector.shape_cast %93 : vector<1x8x8xbf16> to vector<8x8xbf16>
    "tpu.trace_start"() <{level = 10 : i32, message = "qd,kd->qk"}> : () -> ()
    %cst_46 = arith.constant dense<0.000000e+00> : vector<8x8xf32>
    %95 = tpu.matmul %90, %92, %cst_46 {dimension_numbers = #tpu.dot_dimension_numbers<[1], [1], [0], [0], [0, 0, 1, 0], [], []>} : vector<8x8xbf16>, vector<8x8xbf16>, vector<8x8xf32> -> vector<8x8xf32>
    "tpu.trace_stop"() : () -> ()
    %cst_47 = arith.constant 0.353553385 : f32
    %96 = vector.broadcast %cst_47 : f32 to vector<8x8xf32>
    %97 = arith.mulf %95, %96 : vector<8x8xf32>
    %98 = vector.broadcast %3 : vector<1x8xf32> to vector<8x8xf32>
    %99 = arith.addf %97, %98 : vector<8x8xf32>
    %cst_48 = arith.constant dense<0xFF800000> : vector<8xf32>
    %100 = vector.multi_reduction <maximumf>, %99, %cst_48 [1] : vector<8x8xf32> to vector<8xf32>
    %101 = vector.shape_cast %100 : vector<8xf32> to vector<8x1xf32>
    %102 = vector.broadcast %101 : vector<8x1xf32> to vector<8x8xf32>
    %103 = arith.subf %99, %102 : vector<8x8xf32>
    %104 = math.exp %103 : vector<8x8xf32>
    %cst_49 = arith.constant dense<0.000000e+00> : vector<8xf32>
    %105 = vector.multi_reduction <add>, %104, %cst_49 [1] : vector<8x8xf32> to vector<8xf32>
    %106 = vector.shape_cast %105 : vector<8xf32> to vector<8x1xf32>
    %107 = tpu.reciprocal %106 {approx = true} : vector<8x1xf32> -> vector<8x1xf32>
    %108 = vector.broadcast %107 : vector<8x1xf32> to vector<8x8xf32>
    %109 = arith.mulf %104, %108 : vector<8x8xf32>
    %110 = arith.truncf %109 : vector<8x8xf32> to vector<8x8xbf16>
    %cst_50 = arith.constant dense<0.000000e+00> : vector<8x8xf32>
    %111 = tpu.matmul %110, %94, %cst_50 {dimension_numbers = #tpu.dot_dimension_numbers<[1], [0], [0], [1], [0, 0, 1, 1], [], []>} : vector<8x8xbf16>, vector<8x8xbf16>, vector<8x8xf32> -> vector<8x8xf32>
    %112 = arith.truncf %111 : vector<8x8xf32> to vector<8x8xbf16>
    %c0_51 = arith.constant 0 : index
    %c0_52 = arith.constant 0 : index
    %c24_53 = arith.constant 24 : index
    %113 = vector.load %arg4[%c0_51, %c0_52, %c24_53] : memref<1x8x32xbf16, #tpu.memory_space<vmem>>, vector<1x8x8xbf16>
    %114 = vector.shape_cast %113 : vector<1x8x8xbf16> to vector<8x8xbf16>
    %115 = vector.shape_cast %112 : vector<8x8xbf16> to vector<1x8x8xbf16>
    tpu.vector_store %arg4[%c0_51, %c0_52, %c24_53], %115 {strides = array<i32>} : memref<1x8x32xbf16, #tpu.memory_space<vmem>>, vector<1x8x8xbf16>,
    return
  }
  func.func @transform_0(%arg0: i32, %arg1: i32) -> (i32, i32, i32) {
    %c0_i32 = arith.constant 0 : i32
    %c0_i32_0 = arith.constant 0 : i32
    %c0_i32_1 = arith.constant 0 : i32
    return %arg0, %c0_i32, %c0_i32_0 : i32, i32, i32
  }
  func.func @transform_1(%arg0: i32, %arg1: i32) -> (i32, i32, i32) {
    %c0_i32 = arith.constant 0 : i32
    %c0_i32_0 = arith.constant 0 : i32
    %c0_i32_1 = arith.constant 0 : i32
    return %arg0, %c0_i32, %c0_i32_0 : i32, i32, i32
  }
  func.func @transform_2(%arg0: i32, %arg1: i32) -> (i32, i32, i32) {
    %c0_i32 = arith.constant 0 : i32
    %c0_i32_0 = arith.constant 0 : i32
    return %arg0, %arg1, %c0_i32 : i32, i32, i32
  }
}

module attributes {stable_mosaic.version = 11 : i64} {
  func.func @kernel(%arg0: i32, %arg1: i32, %arg2: memref<16x32xbf16, #tpu.memory_space<vmem>>, %arg3: memref<32x32xbf16, #tpu.memory_space<vmem>>, %arg4: memref<1x32xf32, #tpu.memory_space<vmem>>, %arg5: memref<16x32xbf16, #tpu.memory_space<vmem>>, %arg6: memref<1x32xf32, #tpu.memory_space<vmem>>, %arg7: memref<1x32xf32, #tpu.memory_space<vmem>>, %arg8: memref<16x32xbf16, #tpu.memory_space<vmem>>) attributes {dimension_semantics = [#tpu.dimension_semantics<parallel>, #tpu.dimension_semantics<parallel>], iteration_bounds = array<i64: 1, 1>, scalar_prefetch = 0 : i64, scratch_operands = 0 : i64, tpu.core_type = #tpu.core_type<tc>, window_params = [{transform_indices = @transform_0, window_bounds = array<i64: 16, 32>}, {transform_indices = @transform_1, window_bounds = array<i64: 32, 32>}, {transform_indices = @transform_2, window_bounds = array<i64: 1, 32>}, {transform_indices = @transform_3, window_bounds = array<i64: 16, 32>}, {transform_indices = @transform_4, window_bounds = array<i64: 1, 32>}, {transform_indices = @transform_5, window_bounds = array<i64: 1, 32>}, {transform_indices = @transform_6, window_bounds = array<i64: 16, 32>}]} {
    %c0 = arith.constant 0 : index
    %c0_0 = arith.constant 0 : index
    %0 = vector.load %arg2[%c0, %c0_0] : memref<16x32xbf16, #tpu.memory_space<vmem>>, vector<16x32xbf16>
    %c0_1 = arith.constant 0 : index
    %c0_2 = arith.constant 0 : index
    %1 = vector.load %arg3[%c0_1, %c0_2] : memref<32x32xbf16, #tpu.memory_space<vmem>>, vector<32x32xbf16>
    %cst = arith.constant dense<0.000000e+00> : vector<16x32xf32>
    %2 = tpu.matmul %0, %1, %cst {dimension_numbers = #tpu.dot_dimension_numbers<[1], [0], [0], [1], [0, 0, 1, 1], [], []>} : vector<16x32xbf16>, vector<32x32xbf16>, vector<16x32xf32> -> vector<16x32xf32>
    %c0_3 = arith.constant 0 : index
    %c0_4 = arith.constant 0 : index
    %3 = vector.load %arg4[%c0_3, %c0_4] : memref<1x32xf32, #tpu.memory_space<vmem>>, vector<1x32xf32>
    %4 = vector.broadcast %3 : vector<1x32xf32> to vector<16x32xf32>
    %5 = arith.addf %2, %4 : vector<16x32xf32>
    %c0_5 = arith.constant 0 : index
    %c0_6 = arith.constant 0 : index
    %6 = vector.load %arg5[%c0_5, %c0_6] : memref<16x32xbf16, #tpu.memory_space<vmem>>, vector<16x32xbf16>
    %7 = arith.extf %6 : vector<16x32xbf16> to vector<16x32xf32>
    %8 = arith.addf %5, %7 : vector<16x32xf32>
    %cst_7 = arith.constant dense<0.000000e+00> : vector<16xf32>
    %9 = vector.multi_reduction <add>, %8, %cst_7 [1] : vector<16x32xf32> to vector<16xf32>
    %10 = vector.shape_cast %9 : vector<16xf32> to vector<16x1xf32>
    %cst_8 = arith.constant 3.200000e+01 : f32
    %11 = vector.broadcast %cst_8 : f32 to vector<16x1xf32>
    %12 = arith.divf %10, %11 : vector<16x1xf32>
    %13 = vector.broadcast %12 : vector<16x1xf32> to vector<16x32xf32>
    %14 = arith.subf %8, %13 : vector<16x32xf32>
    %15 = arith.mulf %14, %14 : vector<16x32xf32>
    %cst_9 = arith.constant dense<0.000000e+00> : vector<16xf32>
    %16 = vector.multi_reduction <add>, %15, %cst_9 [1] : vector<16x32xf32> to vector<16xf32>
    %17 = vector.shape_cast %16 : vector<16xf32> to vector<16x1xf32>
    %cst_10 = arith.constant 3.200000e+01 : f32
    %18 = vector.broadcast %cst_10 : f32 to vector<16x1xf32>
    %19 = arith.divf %17, %18 : vector<16x1xf32>
    %20 = vector.broadcast %12 : vector<16x1xf32> to vector<16x32xf32>
    %21 = arith.subf %8, %20 : vector<16x32xf32>
    %cst_11 = arith.constant 9.99999974E-6 : f32
    %22 = vector.broadcast %cst_11 : f32 to vector<16x1xf32>
    %23 = arith.addf %19, %22 : vector<16x1xf32>
    %24 = math.rsqrt %23 : vector<16x1xf32>
    %25 = vector.broadcast %24 : vector<16x1xf32> to vector<16x32xf32>
    %26 = arith.mulf %21, %25 : vector<16x32xf32>
    %c0_12 = arith.constant 0 : index
    %c0_13 = arith.constant 0 : index
    %27 = vector.load %arg6[%c0_12, %c0_13] : memref<1x32xf32, #tpu.memory_space<vmem>>, vector<1x32xf32>
    %28 = vector.broadcast %27 : vector<1x32xf32> to vector<16x32xf32>
    %29 = arith.mulf %26, %28 : vector<16x32xf32>
    %c0_14 = arith.constant 0 : index
    %c0_15 = arith.constant 0 : index
    %30 = vector.load %arg7[%c0_14, %c0_15] : memref<1x32xf32, #tpu.memory_space<vmem>>, vector<1x32xf32>
    %31 = vector.broadcast %30 : vector<1x32xf32> to vector<16x32xf32>
    %32 = arith.addf %29, %31 : vector<16x32xf32>
    %33 = arith.truncf %32 : vector<16x32xf32> to vector<16x32xbf16>
    %c0_16 = arith.constant 0 : index
    %c0_17 = arith.constant 0 : index
    %34 = vector.load %arg8[%c0_16, %c0_17] : memref<16x32xbf16, #tpu.memory_space<vmem>>, vector<16x32xbf16>
    tpu.vector_store %arg8[%c0_16, %c0_17], %33 {strides = array<i32>} : memref<16x32xbf16, #tpu.memory_space<vmem>>, vector<16x32xbf16>,
    return
  }
  func.func @transform_0(%arg0: i32, %arg1: i32) -> (i32, i32) {
    %c0_i32 = arith.constant 0 : i32
    %c0_i32_0 = arith.constant 0 : i32
    return %arg0, %c0_i32 : i32, i32
  }
  func.func @transform_1(%arg0: i32, %arg1: i32) -> (i32, i32) {
    %c0_i32 = arith.constant 0 : i32
    %c0_i32_0 = arith.constant 0 : i32
    return %c0_i32, %arg1 : i32, i32
  }
  func.func @transform_2(%arg0: i32, %arg1: i32) -> (i32, i32) {
    %c0_i32 = arith.constant 0 : i32
    %c0_i32_0 = arith.constant 0 : i32
    return %c0_i32, %arg1 : i32, i32
  }
  func.func @transform_3(%arg0: i32, %arg1: i32) -> (i32, i32) {
    %c0_i32 = arith.constant 0 : i32
    return %arg0, %arg1 : i32, i32
  }
  func.func @transform_4(%arg0: i32, %arg1: i32) -> (i32, i32) {
    %c0_i32 = arith.constant 0 : i32
    %c0_i32_0 = arith.constant 0 : i32
    return %c0_i32, %arg1 : i32, i32
  }
  func.func @transform_5(%arg0: i32, %arg1: i32) -> (i32, i32) {
    %c0_i32 = arith.constant 0 : i32
    %c0_i32_0 = arith.constant 0 : i32
    return %c0_i32, %arg1 : i32, i32
  }
  func.func @transform_6(%arg0: i32, %arg1: i32) -> (i32, i32) {
    %c0_i32 = arith.constant 0 : i32
    return %arg0, %arg1 : i32, i32
  }
}

module attributes {stable_mosaic.version = 11 : i64} {
  func.func @kernel(%arg0: i32, %arg1: i32, %arg2: memref<16x32xbf16, #tpu.memory_space<vmem>>, %arg3: memref<32x64xbf16, #tpu.memory_space<vmem>>, %arg4: memref<1x64xf32, #tpu.memory_space<vmem>>, %arg5: memref<16x64xbf16, #tpu.memory_space<vmem>>) attributes {dimension_semantics = [#tpu.dimension_semantics<parallel>, #tpu.dimension_semantics<parallel>], iteration_bounds = array<i64: 1, 1>, scalar_prefetch = 0 : i64, scratch_operands = 0 : i64, tpu.core_type = #tpu.core_type<tc>, window_params = [{transform_indices = @transform_0, window_bounds = array<i64: 16, 32>}, {transform_indices = @transform_1, window_bounds = array<i64: 32, 64>}, {transform_indices = @transform_2, window_bounds = array<i64: 1, 64>}, {transform_indices = @transform_3, window_bounds = array<i64: 16, 64>}]} {
    %c0 = arith.constant 0 : index
    %c0_0 = arith.constant 0 : index
    %0 = vector.load %arg2[%c0, %c0_0] : memref<16x32xbf16, #tpu.memory_space<vmem>>, vector<16x32xbf16>
    %c0_1 = arith.constant 0 : index
    %c0_2 = arith.constant 0 : index
    %1 = vector.load %arg3[%c0_1, %c0_2] : memref<32x64xbf16, #tpu.memory_space<vmem>>, vector<32x64xbf16>
    %cst = arith.constant dense<0.000000e+00> : vector<16x64xf32>
    %2 = tpu.matmul %0, %1, %cst {dimension_numbers = #tpu.dot_dimension_numbers<[1], [0], [0], [1], [0, 0, 1, 1], [], []>} : vector<16x32xbf16>, vector<32x64xbf16>, vector<16x64xf32> -> vector<16x64xf32>
    %c0_3 = arith.constant 0 : index
    %c0_4 = arith.constant 0 : index
    %3 = vector.load %arg4[%c0_3, %c0_4] : memref<1x64xf32, #tpu.memory_space<vmem>>, vector<1x64xf32>
    %4 = vector.broadcast %3 : vector<1x64xf32> to vector<16x64xf32>
    %5 = arith.addf %2, %4 : vector<16x64xf32>
    %cst_5 = arith.constant 5.000000e-01 : f32
    %6 = vector.broadcast %cst_5 : f32 to vector<16x64xf32>
    %7 = arith.mulf %6, %5 : vector<16x64xf32>
    %cst_6 = arith.constant 0.707106769 : f32
    %8 = vector.broadcast %cst_6 : f32 to vector<16x64xf32>
    %9 = arith.mulf %5, %8 : vector<16x64xf32>
    %10 = math.erf %9 : vector<16x64xf32>
    %cst_7 = arith.constant 1.000000e+00 : f32
    %11 = vector.broadcast %cst_7 : f32 to vector<16x64xf32>
    %12 = arith.addf %11, %10 : vector<16x64xf32>
    %13 = arith.mulf %7, %12 : vector<16x64xf32>
    %14 = arith.truncf %13 : vector<16x64xf32> to vector<16x64xbf16>
    %c0_8 = arith.constant 0 : index
    %c0_9 = arith.constant 0 : index
    %15 = vector.load %arg5[%c0_8, %c0_9] : memref<16x64xbf16, #tpu.memory_space<vmem>>, vector<16x64xbf16>
    tpu.vector_store %arg5[%c0_8, %c0_9], %14 {strides = array<i32>} : memref<16x64xbf16, #tpu.memory_space<vmem>>, vector<16x64xbf16>,
    return
  }
  func.func @transform_0(%arg0: i32, %arg1: i32) -> (i32, i32) {
    %c0_i32 = arith.constant 0 : i32
    %c0_i32_0 = arith.constant 0 : i32
    return %arg0, %c0_i32 : i32, i32
  }
  func.func @transform_1(%arg0: i32, %arg1: i32) -> (i32, i32) {
    %c0_i32 = arith.constant 0 : i32
    %c0_i32_0 = arith.constant 0 : i32
    return %c0_i32, %arg1 : i32, i32
  }
  func.func @transform_2(%arg0: i32, %arg1: i32) -> (i32, i32) {
    %c0_i32 = arith.constant 0 : i32
    %c0_i32_0 = arith.constant 0 : i32
    return %c0_i32, %arg1 : i32, i32
  }
  func.func @transform_3(%arg0: i32, %arg1: i32) -> (i32, i32) {
    %c0_i32 = arith.constant 0 : i32
    return %arg0, %arg1 : i32, i32
  }
}

module attributes {stable_mosaic.version = 11 : i64} {
  func.func @kernel(%arg0: i32, %arg1: i32, %arg2: memref<16x64xbf16, #tpu.memory_space<vmem>>, %arg3: memref<64x32xbf16, #tpu.memory_space<vmem>>, %arg4: memref<1x32xf32, #tpu.memory_space<vmem>>, %arg5: memref<16x32xbf16, #tpu.memory_space<vmem>>, %arg6: memref<1x32xf32, #tpu.memory_space<vmem>>, %arg7: memref<1x32xf32, #tpu.memory_space<vmem>>, %arg8: memref<16x32xbf16, #tpu.memory_space<vmem>>) attributes {dimension_semantics = [#tpu.dimension_semantics<parallel>, #tpu.dimension_semantics<parallel>], iteration_bounds = array<i64: 1, 1>, scalar_prefetch = 0 : i64, scratch_operands = 0 : i64, tpu.core_type = #tpu.core_type<tc>, window_params = [{transform_indices = @transform_0, window_bounds = array<i64: 16, 64>}, {transform_indices = @transform_1, window_bounds = array<i64: 64, 32>}, {transform_indices = @transform_2, window_bounds = array<i64: 1, 32>}, {transform_indices = @transform_3, window_bounds = array<i64: 16, 32>}, {transform_indices = @transform_4, window_bounds = array<i64: 1, 32>}, {transform_indices = @transform_5, window_bounds = array<i64: 1, 32>}, {transform_indices = @transform_6, window_bounds = array<i64: 16, 32>}]} {
    %c0 = arith.constant 0 : index
    %c0_0 = arith.constant 0 : index
    %0 = vector.load %arg2[%c0, %c0_0] : memref<16x64xbf16, #tpu.memory_space<vmem>>, vector<16x64xbf16>
    %c0_1 = arith.constant 0 : index
    %c0_2 = arith.constant 0 : index
    %1 = vector.load %arg3[%c0_1, %c0_2] : memref<64x32xbf16, #tpu.memory_space<vmem>>, vector<64x32xbf16>
    %cst = arith.constant dense<0.000000e+00> : vector<16x32xf32>
    %2 = tpu.matmul %0, %1, %cst {dimension_numbers = #tpu.dot_dimension_numbers<[1], [0], [0], [1], [0, 0, 1, 1], [], []>} : vector<16x64xbf16>, vector<64x32xbf16>, vector<16x32xf32> -> vector<16x32xf32>
    %c0_3 = arith.constant 0 : index
    %c0_4 = arith.constant 0 : index
    %3 = vector.load %arg4[%c0_3, %c0_4] : memref<1x32xf32, #tpu.memory_space<vmem>>, vector<1x32xf32>
    %4 = vector.broadcast %3 : vector<1x32xf32> to vector<16x32xf32>
    %5 = arith.addf %2, %4 : vector<16x32xf32>
    %c0_5 = arith.constant 0 : index
    %c0_6 = arith.constant 0 : index
    %6 = vector.load %arg5[%c0_5, %c0_6] : memref<16x32xbf16, #tpu.memory_space<vmem>>, vector<16x32xbf16>
    %7 = arith.extf %6 : vector<16x32xbf16> to vector<16x32xf32>
    %8 = arith.addf %5, %7 : vector<16x32xf32>
    %cst_7 = arith.constant dense<0.000000e+00> : vector<16xf32>
    %9 = vector.multi_reduction <add>, %8, %cst_7 [1] : vector<16x32xf32> to vector<16xf32>
    %10 = vector.shape_cast %9 : vector<16xf32> to vector<16x1xf32>
    %cst_8 = arith.constant 3.200000e+01 : f32
    %11 = vector.broadcast %cst_8 : f32 to vector<16x1xf32>
    %12 = arith.divf %10, %11 : vector<16x1xf32>
    %13 = vector.broadcast %12 : vector<16x1xf32> to vector<16x32xf32>
    %14 = arith.subf %8, %13 : vector<16x32xf32>
    %15 = arith.mulf %14, %14 : vector<16x32xf32>
    %cst_9 = arith.constant dense<0.000000e+00> : vector<16xf32>
    %16 = vector.multi_reduction <add>, %15, %cst_9 [1] : vector<16x32xf32> to vector<16xf32>
    %17 = vector.shape_cast %16 : vector<16xf32> to vector<16x1xf32>
    %cst_10 = arith.constant 3.200000e+01 : f32
    %18 = vector.broadcast %cst_10 : f32 to vector<16x1xf32>
    %19 = arith.divf %17, %18 : vector<16x1xf32>
    %20 = vector.broadcast %12 : vector<16x1xf32> to vector<16x32xf32>
    %21 = arith.subf %8, %20 : vector<16x32xf32>
    %cst_11 = arith.constant 9.99999974E-6 : f32
    %22 = vector.broadcast %cst_11 : f32 to vector<16x1xf32>
    %23 = arith.addf %19, %22 : vector<16x1xf32>
    %24 = math.rsqrt %23 : vector<16x1xf32>
    %25 = vector.broadcast %24 : vector<16x1xf32> to vector<16x32xf32>
    %26 = arith.mulf %21, %25 : vector<16x32xf32>
    %c0_12 = arith.constant 0 : index
    %c0_13 = arith.constant 0 : index
    %27 = vector.load %arg6[%c0_12, %c0_13] : memref<1x32xf32, #tpu.memory_space<vmem>>, vector<1x32xf32>
    %28 = vector.broadcast %27 : vector<1x32xf32> to vector<16x32xf32>
    %29 = arith.mulf %26, %28 : vector<16x32xf32>
    %c0_14 = arith.constant 0 : index
    %c0_15 = arith.constant 0 : index
    %30 = vector.load %arg7[%c0_14, %c0_15] : memref<1x32xf32, #tpu.memory_space<vmem>>, vector<1x32xf32>
    %31 = vector.broadcast %30 : vector<1x32xf32> to vector<16x32xf32>
    %32 = arith.addf %29, %31 : vector<16x32xf32>
    %33 = arith.truncf %32 : vector<16x32xf32> to vector<16x32xbf16>
    %c0_16 = arith.constant 0 : index
    %c0_17 = arith.constant 0 : index
    %34 = vector.load %arg8[%c0_16, %c0_17] : memref<16x32xbf16, #tpu.memory_space<vmem>>, vector<16x32xbf16>
    tpu.vector_store %arg8[%c0_16, %c0_17], %33 {strides = array<i32>} : memref<16x32xbf16, #tpu.memory_space<vmem>>, vector<16x32xbf16>,
    return
  }
  func.func @transform_0(%arg0: i32, %arg1: i32) -> (i32, i32) {
    %c0_i32 = arith.constant 0 : i32
    %c0_i32_0 = arith.constant 0 : i32
    return %arg0, %c0_i32 : i32, i32
  }
  func.func @transform_1(%arg0: i32, %arg1: i32) -> (i32, i32) {
    %c0_i32 = arith.constant 0 : i32
    %c0_i32_0 = arith.constant 0 : i32
    return %c0_i32, %arg1 : i32, i32
  }
  func.func @transform_2(%arg0: i32, %arg1: i32) -> (i32, i32) {
    %c0_i32 = arith.constant 0 : i32
    %c0_i32_0 = arith.constant 0 : i32
    return %c0_i32, %arg1 : i32, i32
  }
  func.func @transform_3(%arg0: i32, %arg1: i32) -> (i32, i32) {
    %c0_i32 = arith.constant 0 : i32
    return %arg0, %arg1 : i32, i32
  }
  func.func @transform_4(%arg0: i32, %arg1: i32) -> (i32, i32) {
    %c0_i32 = arith.constant 0 : i32
    %c0_i32_0 = arith.constant 0 : i32
    return %c0_i32, %arg1 : i32, i32
  }
  func.func @transform_5(%arg0: i32, %arg1: i32) -> (i32, i32) {
    %c0_i32 = arith.constant 0 : i32
    %c0_i32_0 = arith.constant 0 : i32
    return %c0_i32, %arg1 : i32, i32
  }
  func.func @transform_6(%arg0: i32, %arg1: i32) -> (i32, i32) {
    %c0_i32 = arith.constant 0 : i32
    return %arg0, %arg1 : i32, i32
  }
}

module attributes {stable_mosaic.version = 11 : i64} {
  func.func @kernel(%arg0: i32, %arg1: i32, %arg2: memref<16x32xbf16, #tpu.memory_space<vmem>>, %arg3: memref<32x128xbf16, #tpu.memory_space<vmem>>, %arg4: memref<1x128xf32, #tpu.memory_space<vmem>>, %arg5: memref<16x128xf32, #tpu.memory_space<vmem>>) attributes {dimension_semantics = [#tpu.dimension_semantics<parallel>, #tpu.dimension_semantics<parallel>], iteration_bounds = array<i64: 1, 1>, scalar_prefetch = 0 : i64, scratch_operands = 0 : i64, tpu.core_type = #tpu.core_type<tc>, window_params = [{transform_indices = @transform_0, window_bounds = array<i64: 16, 32>}, {transform_indices = @transform_1, window_bounds = array<i64: 32, 128>}, {transform_indices = @transform_2, window_bounds = array<i64: 1, 128>}, {transform_indices = @transform_3, window_bounds = array<i64: 16, 128>}]} {
    %c0 = arith.constant 0 : index
    %c0_0 = arith.constant 0 : index
    %0 = vector.load %arg2[%c0, %c0_0] : memref<16x32xbf16, #tpu.memory_space<vmem>>, vector<16x32xbf16>
    %c0_1 = arith.constant 0 : index
    %c0_2 = arith.constant 0 : index
    %1 = vector.load %arg3[%c0_1, %c0_2] : memref<32x128xbf16, #tpu.memory_space<vmem>>, vector<32x128xbf16>
    %cst = arith.constant dense<0.000000e+00> : vector<16x128xf32>
    %2 = tpu.matmul %0, %1, %cst {dimension_numbers = #tpu.dot_dimension_numbers<[1], [0], [0], [1], [0, 0, 1, 1], [], []>} : vector<16x32xbf16>, vector<32x128xbf16>, vector<16x128xf32> -> vector<16x128xf32>
    %c0_3 = arith.constant 0 : index
    %c0_4 = arith.constant 0 : index
    %3 = vector.load %arg4[%c0_3, %c0_4] : memref<1x128xf32, #tpu.memory_space<vmem>>, vector<1x128xf32>
    %4 = vector.broadcast %3 : vector<1x128xf32> to vector<16x128xf32>
    %5 = arith.addf %2, %4 : vector<16x128xf32>
    %c0_5 = arith.constant 0 : index
    %c0_6 = arith.constant 0 : index
    %6 = vector.load %arg5[%c0_5, %c0_6] : memref<16x128xf32, #tpu.memory_space<vmem>>, vector<16x128xf32>
    tpu.vector_store %arg5[%c0_5, %c0_6], %5 {strides = array<i32>} : memref<16x128xf32, #tpu.memory_space<vmem>>, vector<16x128xf32>,
    return
  }
  func.func @transform_0(%arg0: i32, %arg1: i32) -> (i32, i32) {
    %c0_i32 = arith.constant 0 : i32
    %c0_i32_0 = arith.constant 0 : i32
    return %arg0, %c0_i32 : i32, i32
  }
  func.func @transform_1(%arg0: i32, %arg1: i32) -> (i32, i32) {
    %c0_i32 = arith.constant 0 : i32
    %c0_i32_0 = arith.constant 0 : i32
    return %c0_i32, %arg1 : i32, i32
  }
  func.func @transform_2(%arg0: i32, %arg1: i32) -> (i32, i32) {
    %c0_i32 = arith.constant 0 : i32
    %c0_i32_0 = arith.constant 0 : i32
    return %c0_i32, %arg1 : i32, i32
  }
  func.func @transform_3(%arg0: i32, %arg1: i32) -> (i32, i32) {
    %c0_i32 = arith.constant 0 : i32
    return %arg0, %arg1 : i32, i32
  }
}

</mosaic_0001>

<bundles_post_ra>
// kernel: bert_class_forward.13
= control target key start
LH: loop header
LB: loop body
LE: loop exit
PB: predicated region body
PF: predicated region fallthrough
CT: control target
= control target key end

     0   :  { %vm42_vm0 = vcmask 261120   ;;  %vm62_vm1 = vcmask 781312   ;;  %s124_s1 = inlined_call_operand.vmem [shape: bf16[32,96], index: 1, kind: input, shape index: {}]   ;;  %s125_s2 = inlined_call_operand.vmem [shape: f32[1,96], index: 2, kind: input, shape index: {}]   ;;  %s126_s0 = inlined_call_operand.vmem [shape: bf16[16,32], index: 0, kind: input, shape index: {}]   ;;  %s127_s3 = inlined_call_operand.vmem [shape: bf16[16,96], index: 3, kind: output, shape index: {}]  }
   0x1   :  { %v84_v0 = vld [vmem:[%s124_s1 + $0x8] sm:$0xff]  ;;  %v83_v1 = vld [vmem:[%s124_s1] sm:$0xff] }
   0x2   :  { %52 = vmatpush.bf16.msra.mxu0 %v84_v0  ;;  %v82_v2 = vld [vmem:[%s126_s0] sm:$0xff] }
   0x3   :  { %v85_v3 = vld [vmem:[%s125_s2] ss:$0 sm:$0xff] }
   0x6   :  { %53 = vmatpush.bf16.msra.mxu0 %v83_v1 }
   0x9   :  { %81 = vmatmul.msk.bf16.vlgmr.msra.gmra.mxu0 %vm42_vm0, %v82_v2 }
  0x86   :  { %v55_v4 = vpop.f32.mrf.mxu0 }
  0x87   :  { %v56_v5 = vadd.f32 %v85_v3, %v55_v4 }
  0x89   :  { %v60_v6 = vpack.c.bf16 %v56_v5, %v56_v5 }
  0x8b   :  { %63 = vst.msk [vmem:[%s127_s3] sm:$0xf] %vm62_vm1, %v60_v6 }
  0x8e   :  { %v57_v7 = vpop.f32.mrf.mxu0 }
  0x8f   :  { %v58_v8 = vadd.f32 %v85_v3, %v57_v7 }
  0x91   :  { %v61_v9 = vpack.c.bf16 %v58_v8, %v58_v8 }
  0x93   :  { %64 = vst.msk [vmem:[%s127_s3 + $0x4] sm:$0xf] %vm62_vm1, %v61_v9 }

// kernel: bert_class_forward.15
= control target key start
LH: loop header
LB: loop body
LE: loop exit
PB: predicated region body
PF: predicated region fallthrough
CT: control target
= control target key end

     0   :  { %vm51_vm0 = vcmask 261120   ;;  %v177_v15 = vmov 32.0   ;;  %vm140_vm6 = vcmask 257024   ;;  %s245_s1 = inlined_call_operand.vmem [shape: bf16[32,32], index: 1, kind: input, shape index: {}]   ;;  %s246_s2 = inlined_call_operand.vmem [shape: f32[1,32], index: 2, kind: input, shape index: {}]   ;;  %s247_s0 = inlined_call_operand.vmem [shape: bf16[16,32], index: 0, kind: input, shape index: {}]   ;;  %s248_s3 = inlined_call_operand.vmem [shape: bf16[16,32], index: 3, kind: input, shape index: {}]   ;;  %s249_s4 = inlined_call_operand.vmem [shape: f32[1,32], index: 4, kind: input, shape index: {}]   ;;  %s250_s5 = inlined_call_operand.vmem [shape: f32[1,32], index: 5, kind: input, shape index: {}]   ;;  %s251_s6 = inlined_call_operand.vmem [shape: bf16[16,32], index: 6, kind: output, shape index: {}]  }
   0x1   :  { %v162_v0 = vld [vmem:[%s245_s1 + $0x8] sm:$0xff]  ;;  %v161_v1 = vld [vmem:[%s245_s1] sm:$0xff]  ;;  %171 = vrcp.f32 %v177_v15 }
   0x2   :  { %61 = vmatpush.bf16.msra.mxu0 %v162_v0  ;;  %v160_v2 = vld [vmem:[%s247_s0] sm:$0xff] }
   0x3   :  { %v164_v3 = vld [vmem:[%s248_s3] sm:$0xff]  }
   0x4   :  { %v168_v4 = vld [vmem:[%s246_s2] ss:$0 sm:$0xff]  ;;  %v165_v5 = vunpack.c.l.bf16 %v164_v3  ;;  %v166_v10 = vunpack.c.h.bf16 %v164_v3 }
   0x5   :  { %v169_v46 = vld [vmem:[%s249_s4] ss:$0 sm:$0xff] }
   0x6   :  { %62 = vmatpush.bf16.msra.mxu0 %v161_v1  ;;  %v170_v49 = vld [vmem:[%s250_s5] ss:$0 sm:$0xff] }
   0x7   :  { %v172_v16 = vpop.eup %171 }
   0x8   :  { %v82_v17 = vmul.f32 32.0, %v172_v16  ;;  %vm86_vm1 = vweird.f32 %v172_v16 }
   0x9   :  { %159 = vmatmul.msk.bf16.vlgmr.msra.gmra.mxu0 %vm51_vm0, %v160_v2 }
   0xa   :  { %v83_v18 = vsub.f32 1.0, %v82_v17 }
   0xc   :  { %v84_v19 = vmul.f32 %v172_v16, %v83_v18 }
   0xe   :  { %v85_v20 = vadd.f32 %v172_v16, %v84_v19 }
  0x10   :  { %v87_v21 = vsel %vm86_vm1, %v172_v16, %v85_v20 }
  0x86   :  { %v64_v6 = vpop.f32.mrf.mxu0 }
  0x87   :  { %v65_v7 = vadd.f32 %v168_v4, %v64_v6 }
  0x89   :  { %v73_v8 = vadd.f32 %v165_v5, %v65_v7 }
  0x8b   :  { %v75_v9 = vsel %vm51_vm0, %v73_v8, 0.0 }
  0x8c   :  { %76 = vadd.xlane.f32.xlu0 %v75_v9 }
  0x8e   :  { %v66_v11 = vpop.f32.mrf.mxu0 }
  0x8f   :  { %v67_v12 = vadd.f32 %v168_v4, %v66_v11 }
  0x91   :  { %v74_v13 = vadd.f32 %v166_v10, %v67_v12 }
  0x93   :  { %v78_v14 = vsel %vm51_vm0, %v74_v13, 0.0 }
  0x94   :  { %79 = vadd.xlane.f32.xlu0 %v78_v14 }
  0xff   :  { %v77_v22 = vpop.xlane.xlu0 %76 }
 0x100   :  { %v88_v23 = vmul.f32 %v87_v21, %v77_v22 }
 0x102   :  { %v90_v24 = vsub.f32 %v73_v8, %v88_v23 }
 0x104   :  { %v92_v25 = vmul.f32 %v90_v24, %v90_v24 }
 0x106   :  { %v94_v26 = vsel %vm51_vm0, %v92_v25, 0.0 }
 0x107   :  { %95 = vadd.xlane.f32.xlu1 %v94_v26  ;;  %v80_v27 = vpop.xlane.xlu0 %79 }
 0x108   :  { %v89_v28 = vmul.f32 %v87_v21, %v80_v27 }
 0x10a   :  { %v91_v29 = vsub.f32 %v74_v13, %v89_v28 }
 0x10c   :  { %v93_v30 = vmul.f32 %v91_v29, %v91_v29 }
 0x10e   :  { %v97_v31 = vsel %vm51_vm0, %v93_v30, 0.0 }
 0x10f   :  { %98 = vadd.xlane.f32.xlu1 %v97_v31 }
 0x17a   :  { %v96_v32 = vpop.xlane.xlu1 %95 }
 0x17b   :  { %v100_v33 = vmul.f32 %v96_v32, %v87_v21 }
 0x17d   :  { %v102_v34 = vadd.f32 1e-05, %v100_v33 }
 0x17f   :  { %173 = vrsqrt.f32 %v102_v34  ;;  %vm110_vm3 = vweird.f32 %v102_v34 }
 0x182   :  { %v99_v35 = vpop.xlane.xlu1 %98 }
 0x183   :  { %v101_v36 = vmul.f32 %v99_v35, %v87_v21 }
 0x185   :  { %v174_v37 = vpop.eup %173  ;;  %v103_v38 = vadd.f32 1e-05, %v101_v36 }
 0x186   :  { %v105_v39 = vmul.f32 %v174_v37, %v102_v34  ;;  %vm111_vm2 = vweird.f32 %v174_v37 }
 0x187   :  { %175 = vrsqrt.f32 %v103_v38  ;;  %vm112_vm4 = vmor %vm110_vm3, %vm111_vm2  ;;  %vm120_vm7 = vweird.f32 %v103_v38 }
 0x188   :  { %v106_v40 = vmul.f32 %v174_v37, %v105_v39 }
 0x18a   :  { %v107_v41 = vmul.f32 0.5, %v106_v40 }
 0x18c   :  { %v108_v42 = vsub.f32 1.5, %v107_v41 }
 0x18d   :  { %v176_v43 = vpop.eup %175 }
 0x18e   :  { %v109_v44 = vmul.f32 %v174_v37, %v108_v42  ;;  %v115_v45 = vmul.f32 %v176_v43, %v103_v38  ;;  %vm121_vm5 = vweird.f32 %v176_v43 }
 0x18f   :  { %vm122_vm8 = vmor %vm120_vm7, %vm121_vm5 }
 0x190   :  { %v113_v47 = vsel %vm112_vm4, %v174_v37, %v109_v44  ;;  %v116_v48 = vmul.f32 %v176_v43, %v115_v45 }
 0x191   :  { %v124_v50 = vmul.f32 %v113_v47, %v90_v24 }
 0x192   :  { %v117_v51 = vmul.f32 0.5, %v116_v48 }
 0x193   :  { %v130_v52 = vmul.f32 %v169_v46, %v124_v50 }
 0x194   :  { %v118_v53 = vsub.f32 1.5, %v117_v51 }
 0x195   :  { %v136_v54 = vadd.f32 %v170_v49, %v130_v52 }
 0x196   :  { %v119_v55 = vmul.f32 %v176_v43, %v118_v53 }
 0x197   :  { %v138_v56 = vpack.c.bf16 %v136_v54, %v136_v54 }
 0x198   :  { %v123_v57 = vsel %vm122_vm8, %v176_v43, %v119_v55 }
 0x199   :  { %141 = vst.msk [vmem:[%s251_s6] sm:$0xf] %vm140_vm6, %v138_v56  ;;  %v125_v58 = vmul.f32 %v123_v57, %v91_v29 }
 0x19b   :  { %v131_v59 = vmul.f32 %v169_v46, %v125_v58 }
 0x19d   :  { %v137_v60 = vadd.f32 %v170_v49, %v131_v59 }
 0x19f   :  { %v139_v61 = vpack.c.bf16 %v137_v60, %v137_v60 }
 0x1a1   :  { %142 = vst.msk [vmem:[%s251_s6 + $0x4] sm:$0xf] %vm140_vm6, %v139_v61 }

// kernel: bert_class_forward.12
= control target key start
LH: loop header
LB: loop body
LE: loop exit
PB: predicated region body
PF: predicated region fallthrough
CT: control target
= control target key end

     0   :  { %vm16_vm0 = vcmask 261120   ;;  %v98_v4 = vmov 32.0   ;;  %vm82_vm6 = vcmask 257024   ;;  %s141_s0 = inlined_call_operand.vmem [shape: f32[16,32], index: 0, kind: input, shape index: {}]   ;;  %s142_s1 = inlined_call_operand.vmem [shape: f32[1,32], index: 1, kind: input, shape index: {}]   ;;  %s143_s2 = inlined_call_operand.vmem [shape: f32[1,32], index: 2, kind: input, shape index: {}]   ;;  %s144_s3 = inlined_call_operand.vmem [shape: bf16[16,32], index: 3, kind: output, shape index: {}]  }
   0x1   :  { %v14_v0 = vld [vmem:[%s141_s0] sm:$0xff]  ;;  %v15_v2 = vld [vmem:[%s141_s0 + $0x8] sm:$0xff]  ;;  %92 = vrcp.f32 %v98_v4 }
   0x2   :  { %v17_v1 = vsel %vm16_vm0, %v14_v0, 0.0  ;;  %v20_v3 = vsel %vm16_vm0, %v15_v2, 0.0  ;;  %v90_v35 = vld [vmem:[%s142_s1] ss:$0 sm:$0xff] }
   0x3   :  { %18 = vadd.xlane.f32.xlu0 %v17_v1  ;;  %v91_v38 = vld [vmem:[%s143_s2] ss:$0 sm:$0xff] }
   0x7   :  { %v93_v5 = vpop.eup %92 }
   0x8   :  { %v24_v6 = vmul.f32 32.0, %v93_v5  ;;  %vm28_vm1 = vweird.f32 %v93_v5 }
   0xa   :  { %v25_v7 = vsub.f32 1.0, %v24_v6 }
   0xb   :  { %21 = vadd.xlane.f32.xlu0 %v20_v3 }
   0xc   :  { %v26_v8 = vmul.f32 %v93_v5, %v25_v7 }
   0xe   :  { %v27_v9 = vadd.f32 %v93_v5, %v26_v8 }
  0x10   :  { %v29_v10 = vsel %vm28_vm1, %v93_v5, %v27_v9 }
  0x76   :  { %v19_v11 = vpop.xlane.xlu0 %18 }
  0x77   :  { %v30_v12 = vmul.f32 %v29_v10, %v19_v11 }
  0x79   :  { %v32_v13 = vsub.f32 %v14_v0, %v30_v12 }
  0x7b   :  { %v34_v14 = vmul.f32 %v32_v13, %v32_v13 }
  0x7d   :  { %v36_v15 = vsel %vm16_vm0, %v34_v14, 0.0 }
  0x7e   :  { %37 = vadd.xlane.f32.xlu1 %v36_v15  ;;  %v22_v16 = vpop.xlane.xlu0 %21 }
  0x7f   :  { %v31_v17 = vmul.f32 %v29_v10, %v22_v16 }
  0x81   :  { %v33_v18 = vsub.f32 %v15_v2, %v31_v17 }
  0x83   :  { %v35_v19 = vmul.f32 %v33_v18, %v33_v18 }
  0x85   :  { %v39_v20 = vsel %vm16_vm0, %v35_v19, 0.0 }
  0x86   :  { %40 = vadd.xlane.f32.xlu1 %v39_v20 }
  0xf1   :  { %v38_v21 = vpop.xlane.xlu1 %37 }
  0xf2   :  { %v42_v22 = vmul.f32 %v38_v21, %v29_v10 }
  0xf4   :  { %v44_v23 = vadd.f32 1e-05, %v42_v22 }
  0xf6   :  { %94 = vrsqrt.f32 %v44_v23  ;;  %vm52_vm3 = vweird.f32 %v44_v23 }
  0xf9   :  { %v41_v24 = vpop.xlane.xlu1 %40 }
  0xfa   :  { %v43_v25 = vmul.f32 %v41_v24, %v29_v10 }
  0xfc   :  { %v95_v26 = vpop.eup %94  ;;  %v45_v27 = vadd.f32 1e-05, %v43_v25 }
  0xfd   :  { %v47_v28 = vmul.f32 %v95_v26, %v44_v23  ;;  %vm53_vm2 = vweird.f32 %v95_v26 }
  0xfe   :  { %96 = vrsqrt.f32 %v45_v27  ;;  %vm54_vm4 = vmor %vm52_vm3, %vm53_vm2  ;;  %vm62_vm7 = vweird.f32 %v45_v27 }
  0xff   :  { %v48_v29 = vmul.f32 %v95_v26, %v47_v28 }
 0x101   :  { %v49_v30 = vmul.f32 0.5, %v48_v29 }
 0x103   :  { %v50_v31 = vsub.f32 1.5, %v49_v30 }
 0x104   :  { %v97_v32 = vpop.eup %96 }
 0x105   :  { %v51_v33 = vmul.f32 %v95_v26, %v50_v31  ;;  %v57_v34 = vmul.f32 %v97_v32, %v45_v27  ;;  %vm63_vm5 = vweird.f32 %v97_v32 }
 0x106   :  { %vm64_vm8 = vmor %vm62_vm7, %vm63_vm5 }
 0x107   :  { %v55_v36 = vsel %vm54_vm4, %v95_v26, %v51_v33  ;;  %v58_v37 = vmul.f32 %v97_v32, %v57_v34 }
 0x108   :  { %v66_v39 = vmul.f32 %v55_v36, %v32_v13 }
 0x109   :  { %v59_v40 = vmul.f32 0.5, %v58_v37 }
 0x10a   :  { %v72_v41 = vmul.f32 %v90_v35, %v66_v39 }
 0x10b   :  { %v60_v42 = vsub.f32 1.5, %v59_v40 }
 0x10c   :  { %v78_v43 = vadd.f32 %v91_v38, %v72_v41 }
 0x10d   :  { %v61_v44 = vmul.f32 %v97_v32, %v60_v42 }
 0x10e   :  { %v80_v45 = vpack.c.bf16 %v78_v43, %v78_v43 }
 0x10f   :  { %v65_v46 = vsel %vm64_vm8, %v97_v32, %v61_v44 }
 0x110   :  { %83 = vst.msk [vmem:[%s144_s3] sm:$0xf] %vm82_vm6, %v80_v45  ;;  %v67_v47 = vmul.f32 %v65_v46, %v33_v18 }
 0x112   :  { %v73_v48 = vmul.f32 %v90_v35, %v67_v47 }
 0x114   :  { %v79_v49 = vadd.f32 %v91_v38, %v73_v48 }
 0x116   :  { %v81_v50 = vpack.c.bf16 %v79_v49, %v79_v49 }
 0x118   :  { %84 = vst.msk [vmem:[%s144_s3 + $0x4] sm:$0xf] %vm82_vm6, %v81_v50 }

// kernel: bert_class_forward.14
= control target key start
LH: loop header
LB: loop body
LE: loop exit
PB: predicated region body
PF: predicated region fallthrough
CT: control target
= control target key end

     0   :  { %s675_s9 = smov 0   ;;  %s677_s10 = smov 0   ;;  %s773_s0 = inlined_call_operand.vmem [shape: bf16[2,8,96], index: 0, kind: input, shape index: {}]   ;;  %s774_s1 = inlined_call_operand.vmem [shape: f32[2,1,8], index: 1, kind: input, shape index: {}]   ;;  %s775_s2 = inlined_call_operand.vmem [shape: bf16[2,8,32], index: 2, kind: output, shape index: {}]  }
   0x1   :  { %s679_s11 = smov 0  }
   0x2 LB: > { %s24_s12 = sadd.s32 1, %s640_s10  ;;  %p554_p0 = scmp.ge.s32.totalorder %s644_s11, 1  ;;  %s644_s11 = sphi %s679_s11, %s12_s11   ;;  %s640_s10 = sphi %s677_s10, %s777_s10   ;;  %s636_s9 = sphi %s675_s9, %s776_s9  }
   0x3   : > { %p26_p1 = scmp.ge.s32.totalorder %s24_s12, 2  ;;  %p133_p2 = scmp.lt.s32.totalorder %s644_s11, 3 }
   0x5   : > { %s779_s12 = smov (%p26_p1, %s24_s12), 0  ;;  %p134_p3 = pnand %p554_p0, %p133_p2 }
   0x6   : > { %p159_p4 = scmp.lt.s32.totalorder (!%p134_p3), %s636_s9, 1  ;;  %s646_s17 = smov (!%p134_p3), 96  }
   0x7   : > { %137 = sbr.rel (%p134_p3) target bundleno = 1201 (0x4b1), region = 28  ;;  %s647_s18 = smov (!%p134_p3), 88  }
   0x8   : > { %s648_s22 = smov (!%p134_p3), 120   ;;  %s649_s23 = smov (!%p134_p3), 64  }
   0x9   : > { %s650_s24 = smov (!%p134_p3), 80   ;;  %s651_s25 = smov (!%p134_p3), 72  }
   0xa   : > { %s652_s26 = smov (!%p134_p3), 112   ;;  %s653_s27 = smov (!%p134_p3), 104  }
   0xb   : > { %s654_s28 = smov (!%p134_p3), 56   ;;  %s655_s29 = smov (!%p134_p3), 40  }
   0xc   : > { %s781_s9 = smov (!%p159_p4, %s636_s9), 1  ;;  %vm187_vm0 = vcmask 64512   ;;  %vm229_vm1 = vcmask 1043456   ;;  %vm247_vm2 = vcmask 60416   ;;  %s656_s5 = smov 48   ;;  %vm320_vm3 = vcmask 126016  }
   0xd   : > { %s555_s13 = sshll.u32 %s781_s9, 2  ;;  %s165_s21 = scalar_lea.vmem %s774_s1, %s781_s9  ;;  %vm393_vm4 = vcmask 191616   ;;  %vm466_vm5 = vcmask 257216  }
   0xe   : > { %s701_s16 = scalar_lea.vmem %s773_s0, %s555_s13  ;;  %v722_v19 = vld [vmem:[%s165_s21] ss:$0 sm:$0xff]  ;;  %s746_s4 = scalar_lea.vmem %s775_s2, %s555_s13 }
   0xf   : > { %v181_v0 = vld [vmem:[%s701_s16] sm:$0xf]  ;;  %s657_s6 = smov 8   ;;  %s658_s7 = smov 16  }
  0x10   : > { %v183_v1 = vunpack.c.l.b16 %v181_v0  ;;  %v250_v3 = vld [vmem:[%s701_s16] sm:$0xf]  ;;  %s659_s8 = smov 24  }
  0x11   : > { %v257_v4 = vunpack.c.l.b16 %v250_v3  ;;  %v180_v8 = vld [vmem:[%s701_s16] sm:$0xf] }
  0x12   : > { %v184_v2 = vpack.c.b16 %v183_v1, %v183_v1  ;;  %v249_v9 = vld [vmem:[%s701_s16] sm:$0xf] }
  0x13   : > { %v705_v5 = vpack.c.b16 %v257_v4, %v257_v4  ;;  %v252_v10 = vunpack.c.l.b16 %v249_v9  ;;  %v323_v12 = vld [vmem:[%s701_s16] sm:$0xf] }
  0x14   : > { %185 = vrot.lane.b32.xlu0 %v184_v2, %s646_s17  ;;  %v330_v13 = vunpack.c.l.b16 %v323_v12  ;;  %v396_v17 = vld [vmem:[%s701_s16] sm:$0xf] }
  0x15   : > { %259 = vrot.lane.b32.xlu1 %v705_v5, %s647_s18  ;;  %v253_v11 = vpack.c.b16 %v252_v10, %v252_v10  ;;  %v403_v18 = vunpack.c.l.b16 %v396_v17  ;;  %v322_v23 = vld [vmem:[%s701_s16] sm:$0xf] }
  0x16   : > { %v718_v16 = vpack.c.b16 %v330_v13, %v330_v13  ;;  %v325_v26 = vunpack.c.l.b16 %v322_v23  ;;  %v395_v29 = vld [vmem:[%s701_s16] sm:$0xf] }
  0x17   : > { %254 = vrot.lane.b32.xlu2 %v253_v11, %s648_s22  ;;  %v404_v22 = vpack.c.b16 %v403_v18, %v403_v18  ;;  %v398_v30 = vunpack.c.l.b16 %v395_v29 }
  0x18   : > { %v326_v28 = vpack.c.b16 %v325_v26, %v325_v26 }
  0x19   : > { %v399_v31 = vpack.c.b16 %v398_v30, %v398_v30 }
  0x1f   : > { %224 = vrot.lane.b32.xlu2 %v184_v2, %s649_s23 }
  0x27   : > { %332 = vrot.lane.b32.xlu2 %v718_v16, %s650_s24 }
  0x2f   : > { %405 = vrot.lane.b32.xlu2 %v404_v22, %s651_s25 }
  0x37   : > { %327 = vrot.lane.b32.xlu2 %v326_v28, %s652_s26 }
  0x3f   : > { %400 = vrot.lane.b32.xlu2 %v399_v31, %s653_s27 }
  0x71   : > { %v255_v32 = vpop.permute.xlu2 %254 }
  0x79   : > { %v225_v33 = vpop.permute.xlu2 %224 }
  0x7a   : > { %v231_v37 = vsel %vm229_vm1, %v225_v33, 0 }
  0x7b   : > { %240 = vmatpush.bf16.msra.mxu1 %v231_v37 }
  0x81   : > { %v333_v34 = vpop.permute.xlu2 %332 }
  0x82   : > { %v338_v45 = vsel %vm187_vm0, %v333_v34, 0 }
  0x83   : > { %347 = vmatpush.bf16.xpose.msrb.mxu1 %v338_v45 }
  0x86   : > { %v186_v6 = vpop.permute.xlu0 %185 }
  0x87   : > { %v192_v7 = vsel %vm187_vm0, %v186_v6, 0  ;;  %v260_v14 = vpop.permute.xlu1 %259 }
  0x88   : > { %201 = vmatpush.bf16.xpose.msra.mxu0 %v192_v7  ;;  %v265_v15 = vsel %vm187_vm0, %v260_v14, 0 }
  0x89   : > { %274 = vmatpush.bf16.xpose.msra.mxu2 %v265_v15  ;;  %v406_v35 = vpop.permute.xlu2 %405 }
  0x8a   : > { %v411_v36 = vsel %vm187_vm0, %v406_v35, 0 }
  0x8f   : > { %557 = vmatmul.msk.bf16.vlgmr.msra.gmra.mxu0 %vm187_vm0, %v180_v8 }
  0x90   : > { %559 = vmatmul.msk.bf16.vlgmr.msra.gmra.mxu2 %vm187_vm0, %v255_v32  ;;  %420 = vmatpush.bf16.xpose.msrb.mxu0 %v411_v36 }
  0x91   : > { %v328_v38 = vpop.permute.xlu2 %327 }
  0x99   : > { %v401_v39 = vpop.permute.xlu2 %400 }
  0x9f   : > { %563 = vmatmul.msk.bf16.vlgmr.msrb.gmra.mxu0 %vm187_vm0, %v401_v39 }
 0x10c   : > { %v203_v20 = vpop.f32.mrf.mxu0 }
 0x10d   : > { %v207_v21 = vmul.f32 0.35355338, %v203_v20 }
 0x10f   : > { %v211_v24 = vadd.f32 %v722_v19, %v207_v21 }
 0x111   : > { %v212_v25 = vsel %vm187_vm0, %v211_v24, -inf }
 0x112   : > { %213 = vmax.xlane.f32.xlu0 %v212_v25 }
 0x113   : > { %v276_v46 = vpop.f32.mrf.mxu2 }
 0x114   : > { %v205_v27 = vpop.f32.mrf.mxu0  ;;  %v280_v47 = vmul.f32 0.35355338, %v276_v46 }
 0x116   : > { %v281_v48 = vadd.f32 %v722_v19, %v280_v47 }
 0x118   : > { %v282_v49 = vsel %vm187_vm0, %v281_v48, -inf }
 0x119   : > { %283 = vmax.xlane.f32.xlu2 %v282_v49 }
 0x11b   : > { %v278_v50 = vpop.f32.mrf.mxu2 }
 0x11c   : > { %v422_v51 = vpop.f32.mrf.mxu0 }
 0x11d   : > { %v426_v52 = vmul.f32 0.35355338, %v422_v51 }
 0x11f   : > { %v427_v53 = vadd.f32 %v722_v19, %v426_v52 }
 0x121   : > { %v428_v55 = vsel %vm187_vm0, %v427_v53, -inf }
 0x124   : > { %v424_v56 = vpop.f32.mrf.mxu0 }
 0x185   : > { %v214_v40 = vpop.xlane.xlu0 %213 }
 0x186   : > { %v215_v41 = vsub.f32 %v211_v24, %v214_v40 }
 0x188   : > { %v216_v42 = vmul.f32 1.442695, %v215_v41 }
 0x18a   : > { %606 = vpow2.f32 %v216_v42 }
 0x18c   : > { %v284_v63 = vpop.xlane.xlu2 %283 }
 0x18d   : > { %v285_v0 = vsub.f32 %v281_v48, %v284_v63 }
 0x18f   : > { %v286_v1 = vmul.f32 1.442695, %v285_v0 }
 0x190   : > { %v607_v43 = vpop.eup %606 }
 0x191   : > { %v218_v44 = vsel %vm187_vm0, %v607_v43, 0.0 }
 0x192   : > { %219 = vadd.xlane.f32.xlu1 %v218_v44 }
 0x19a   : > { %429 = vmax.xlane.f32.xlu1 %v428_v55 }
 0x1b3   : > { %294 = vrot.lane.b32.xlu1 %v705_v5, %s654_s28 }
 0x1bb   : > { %440 = vrot.lane.b32.xlu1 %v404_v22, %s655_s29 }
 0x205   : > { %v220_v54 = vpop.xlane.xlu1 %219 }
 0x206   : > { %608 = vrcp.f32 %v220_v54 }
 0x207   : > { %610 = vpow2.f32 %v286_v1 }
 0x20c   : > { %v609_v57 = vpop.eup %608 }
 0x20d   : > { %v222_v58 = vmul.f32 %v609_v57, %v607_v43  ;;  %v430_v3 = vpop.xlane.xlu1 %429  ;;  %v611_v10 = vpop.eup %610 }
 0x20e   : > { %v431_v6 = vsub.f32 %v427_v53, %v430_v3  ;;  %v288_v11 = vsel %vm187_vm0, %v611_v10, 0.0 }
 0x20f   : > { %v223_v59 = vpack.c.bf16 %v222_v58, %v222_v58 }
 0x210   : > { %v432_v8 = vmul.f32 1.442695, %v431_v6 }
 0x211   : > { %558 = vmatmul.msk.bf16.vlgmr.msra.gmra.mxu1 %vm187_vm0, %v223_v59 }
 0x212   : > { %612 = vpow2.f32 %v432_v8 }
 0x218   : > { %v613_v12 = vpop.eup %612 }
 0x219   : > { %v434_v13 = vsel %vm187_vm0, %v613_v12, 0.0 }
 0x221   : > { %561 = vmatmul.msk.bf16.vlgmr.msrb.gmra.mxu1 %vm187_vm0, %v328_v38 }
 0x225   : > { %v295_v14 = vpop.permute.xlu1 %294 }
 0x226   : > { %v300_v15 = vsel %vm229_vm1, %v295_v14, 0 }
 0x227   : > { %309 = vmatpush.bf16.msra.mxu3 %v300_v15 }
 0x22d   : > { %v441_v17 = vpop.permute.xlu1 %440 }
 0x22e   : > { %v446_v18 = vsel %vm229_vm1, %v441_v17, 0 }
 0x22f   : > { %455 = vmatpush.bf16.msrb.mxu2 %v446_v18 }
 0x28e   : > { %v242_v60 = vpop.f32.mrf.mxu1 }
 0x28f   : > { %v246_v61 = vpack.c.bf16 %v242_v60, %v242_v60 }
 0x291   : > { %248 = vst.msk [vmem:[%s746_s4] sm:$0xf] %vm247_vm2, %v246_v61 }
 0x296   : > { %v244_v62 = vpop.f32.mrf.mxu1 }
 0x29e   : > { %v349_v2 = vpop.f32.mrf.mxu1 }
 0x29f   : > { %v353_v4 = vmul.f32 0.35355338, %v349_v2 }
 0x2a1   : > { %v354_v5 = vadd.f32 %v722_v19, %v353_v4 }
 0x2a3   : > { %v355_v7 = vsel %vm187_vm0, %v354_v5, -inf }
 0x2a4   : > { %356 = vmax.xlane.f32.xlu0 %v355_v7 }
 0x2a6   : > { %v351_v9 = vpop.f32.mrf.mxu1 }
 0x2ac   : > { %289 = vadd.xlane.f32.xlu0 %v288_v11 }
 0x2b4   : > { %435 = vadd.xlane.f32.xlu0 %v434_v13 }
 0x317   : > { %v357_v19 = vpop.xlane.xlu0 %356 }
 0x318   : > { %v358_v20 = vsub.f32 %v354_v5, %v357_v19 }
 0x31a   : > { %v359_v21 = vmul.f32 1.442695, %v358_v20 }
 0x31c   : > { %614 = vpow2.f32 %v359_v21 }
 0x31f   : > { %v290_v22 = vpop.xlane.xlu0 %289 }
 0x320   : > { %616 = vrcp.f32 %v290_v22 }
 0x322   : > { %v615_v23 = vpop.eup %614 }
 0x323   : > { %v361_v24 = vsel %vm187_vm0, %v615_v23, 0.0 }
 0x324   : > { %362 = vadd.xlane.f32.xlu0 %v361_v24 }
 0x326   : > { %v617_v25 = vpop.eup %616 }
 0x327   : > { %v436_v26 = vpop.xlane.xlu0 %435  ;;  %v292_v27 = vmul.f32 %v617_v25, %v611_v10 }
 0x328   : > { %618 = vrcp.f32 %v436_v26 }
 0x329   : > { %v293_v28 = vpack.c.bf16 %v292_v27, %v292_v27 }
 0x32b   : > { %560 = vmatmul.msk.bf16.vlgmr.msra.gmra.mxu3 %vm187_vm0, %v293_v28 }
 0x32e   : > { %v619_v29 = vpop.eup %618 }
 0x32f   : > { %v438_v30 = vmul.f32 %v619_v29, %v613_v12 }
 0x331   : > { %v439_v31 = vpack.c.bf16 %v438_v30, %v438_v30 }
 0x333   : > { %564 = vmatmul.msk.bf16.vlgmr.msrb.gmra.mxu2 %vm187_vm0, %v439_v31 }
 0x338   : > { %367 = vrot.lane.b32.xlu0 %v718_v16, %s656_s5 }
 0x397   : > { %v363_v32 = vpop.xlane.xlu0 %362 }
 0x398   : > { %620 = vrcp.f32 %v363_v32 }
 0x39e   : > { %v621_v33 = vpop.eup %620 }
 0x39f   : > { %v365_v34 = vmul.f32 %v621_v33, %v615_v23 }
 0x3a1   : > { %v366_v37 = vpack.c.bf16 %v365_v34, %v365_v34 }
 0x3aa   : > { %v368_v35 = vpop.permute.xlu0 %367 }
 0x3ab   : > { %v373_v36 = vsel %vm229_vm1, %v368_v35, 0 }
 0x3ac   : > { %382 = vmatpush.bf16.msrb.mxu3 %v373_v36 }
 0x3ae   : > { %v311_v38 = vpop.f32.mrf.mxu3 }
 0x3af   : > { %v315_v39 = vpack.c.bf16 %v311_v38, %v311_v38  ;;  %562 = vmatmul.msk.bf16.vlgmr.msrb.gmra.mxu3 %vm187_vm0, %v366_v37 }
 0x3b1   : > { %317 = vrot.lane.b32.xlu2 %v315_v39, %s657_s6 }
 0x3b6   : > { %v313_v40 = vpop.f32.mrf.mxu3  ;;  %v457_v41 = vpop.f32.mrf.mxu2 }
 0x3b7   : > { %v461_v46 = vpack.c.bf16 %v457_v41, %v457_v41 }
 0x3be   : > { %v459_v16 = vpop.f32.mrf.mxu2 }
 0x40b   : > { %v318_v42 = vpop.permute.xlu2 %317 }
 0x40c   : > { %321 = vst.msk [vmem:[%s746_s4] sm:$0xf] %vm320_vm3, %v318_v42 }
 0x432   : > { %v384_v43 = vpop.f32.mrf.mxu3 }
 0x433   : > { %v388_v44 = vpack.c.bf16 %v384_v43, %v384_v43 }
 0x435   : > { %390 = vrot.lane.b32.xlu1 %v388_v44, %s658_s7 }
 0x43a   : > { %v386_v45 = vpop.f32.mrf.mxu3 }
 0x43d   : > { %463 = vrot.lane.b32.xlu1 %v461_v46, %s659_s8 }
 0x4a7   : > { %v391_v47 = vpop.permute.xlu1 %390 }
 0x4a8   : > { %394 = vst.msk [vmem:[%s746_s4] sm:$0xf] %vm393_vm4, %v391_v47 }
 0x4af   : > { %v464_v48 = vpop.permute.xlu1 %463 }
 0x4b0   : > { %467 = vst.msk [vmem:[%s746_s4] sm:$0xf] %vm466_vm5, %v464_v48 }
 0x4b1 PF: > { %s12_s11 = sadd.s32 1, %s644_s11   ;;  %s776_s9 = smov %s640_s10 }
 0x4b2   : > { %p9_p5 = scmp.ge.s32.totalorder %s12_s11, 4   ;;  %s777_s10 = smov %s779_s12 }
 0x4b4   :  { %11 = sbr.rel (!%p9_p5) target bundleno = 2 (0x2), region = 62 }

// kernel: bert_class_forward.16
= control target key start
LH: loop header
LB: loop body
LE: loop exit
PB: predicated region body
PF: predicated region fallthrough
CT: control target
= control target key end

     0   :  { %vm42_vm0 = vcmask 261120   ;;  %vm150_vm8 = vcmask 519168   ;;  %s231_s1 = inlined_call_operand.vmem [shape: bf16[32,64], index: 1, kind: input, shape index: {}]   ;;  %s232_s2 = inlined_call_operand.vmem [shape: f32[1,64], index: 2, kind: input, shape index: {}]   ;;  %s233_s0 = inlined_call_operand.vmem [shape: bf16[16,32], index: 0, kind: input, shape index: {}]   ;;  %s234_s3 = inlined_call_operand.vmem [shape: bf16[16,64], index: 3, kind: output, shape index: {}]  }
   0x1   :  { %v174_v0 = vld [vmem:[%s231_s1 + $0x8] sm:$0xff]  ;;  %v173_v1 = vld [vmem:[%s231_s1] sm:$0xff] }
   0x2   :  { %52 = vmatpush.bf16.msra.mxu0 %v174_v0  ;;  %v172_v2 = vld [vmem:[%s233_s0] sm:$0xff] }
   0x3   :  { %v175_v3 = vld [vmem:[%s232_s2] ss:$0 sm:$0xff] }
   0x6   :  { %53 = vmatpush.bf16.msra.mxu0 %v173_v1 }
   0x9   :  { %169 = vmatmul.msk.bf16.vlgmr.msra.gmra.mxu0 %vm42_vm0, %v172_v2 }
  0x86   :  { %v55_v4 = vpop.f32.mrf.mxu0 }
  0x87   :  { %v212_v5 = vadd.f32 %v175_v3, %v55_v4 }
  0x89   :  { %v62_v6 = vmul.f32 0.70710677, %v212_v5 }
  0x8b   :  { %v64_v7 = vmul.f32 %v62_v6, %v62_v6 }
  0x8d   :  { %v65_v8 = vmin.f32 %v64_v7, 16.0 }
  0x8e   :  { %v57_v9 = vpop.f32.mrf.mxu0 }
  0x8f   :  { %v66_v10 = vmul.f32 2.1237322e-06, %v65_v8  ;;  %v77_v11 = vmul.f32 3.8918573e-05, %v65_v8  ;;  %v215_v12 = vadd.f32 %v175_v3, %v57_v9 }
  0x91   :  { %v67_v13 = vadd.f32 0.00028619796, %v66_v10  ;;  %v78_v14 = vadd.f32 0.001143296, %v77_v11  ;;  %v218_v15 = vmul.f32 0.70710677, %v215_v12 }
  0x92   :  { %v60_v11 = vmul.f32 0.5, %v212_v5  ;;  %v61_v5 = vmul.f32 0.5, %v215_v12 }
  0x93   :  { %v68_v16 = vmul.f32 %v67_v13, %v65_v8  ;;  %v79_v17 = vmul.f32 %v78_v14, %v65_v8  ;;  %v104_v18 = vmul.f32 %v218_v15, %v218_v15 }
  0x95   :  { %v80_v19 = vadd.f32 0.014752088, %v79_v17  ;;  %v69_v20 = vadd.f32 0.0036580483, %v68_v16  ;;  %v105_v21 = vmin.f32 %v104_v18, 16.0 }
  0x97   :  { %v81_v22 = vmul.f32 %v80_v19, %v65_v8  ;;  %v106_v23 = vmul.f32 2.1237322e-06, %v105_v21  ;;  %v117_v24 = vmul.f32 3.8918573e-05, %v105_v21  ;;  %v70_v26 = vmul.f32 %v69_v20, %v65_v8 }
  0x99   :  { %v82_v25 = vadd.f32 0.112945676, %v81_v22  ;;  %v107_v27 = vadd.f32 0.00028619796, %v106_v23  ;;  %v118_v28 = vadd.f32 0.001143296, %v117_v24 }
  0x9a   :  { %v71_v33 = vadd.f32 0.05243302, %v70_v26 }
  0x9b   :  { %v83_v29 = vmul.f32 %v82_v25, %v65_v8  ;;  %v108_v30 = vmul.f32 %v107_v27, %v105_v21  ;;  %v119_v31 = vmul.f32 %v118_v28, %v105_v21 }
  0x9c   :  { %v72_v39 = vmul.f32 %v71_v33, %v65_v8 }
  0x9d   :  { %v84_v32 = vadd.f32 0.4994258, %v83_v29  ;;  %v120_v34 = vadd.f32 0.014752088, %v119_v31  ;;  %v109_v36 = vadd.f32 0.0036580483, %v108_v30 }
  0x9e   :  { %v73_v43 = vadd.f32 0.18741608, %v72_v39 }
  0x9f   :  { %v85_v35 = vmul.f32 %v84_v32, %v65_v8  ;;  %v121_v37 = vmul.f32 %v120_v34, %v105_v21  ;;  %v110_v41 = vmul.f32 %v109_v36, %v105_v21 }
  0xa0   :  { %v74_v48 = vmul.f32 %v73_v43, %v65_v8 }
  0xa1   :  { %v86_v38 = vadd.f32 1.0, %v85_v35  ;;  %v122_v40 = vadd.f32 0.112945676, %v121_v37  ;;  %v111_v45 = vadd.f32 0.05243302, %v110_v41 }
  0xa2   :  { %v75_v54 = vadd.f32 1.1283791, %v74_v48 }
  0xa3   :  { %176 = vrcp.f32 %v86_v38  ;;  %v123_v42 = vmul.f32 %v122_v40, %v105_v21  ;;  %v112_v51 = vmul.f32 %v111_v45, %v105_v21  ;;  %v98_v53 = vand.u32 2147483648, %v86_v38 }
  0xa4   :  { %v96_v56 = vand.u32 2147483647, %v86_v38  ;;  %vm92_vm2 = vweird.f32 %v86_v38  ;;  %v76_v61 = vmul.f32 %v75_v54, %v62_v6 }
  0xa5   :  { %v124_v44 = vadd.f32 0.4994258, %v123_v42  ;;  %v113_v57 = vadd.f32 0.18741608, %v112_v51  ;;  %v99_v59 = vor.u32 1.1754944e-38, %v98_v53 }
  0xa6   :  { %vm97_vm4 = vcmp.eq.f32.partialorder %v96_v56, 8.507059e+37 }
  0xa7   :  { %v125_v46 = vmul.f32 %v124_v44, %v105_v21  ;;  %v114_v0 = vmul.f32 %v113_v57, %v105_v21 }
  0xa9   :  { %v177_v47 = vpop.eup %176  ;;  %v126_v50 = vadd.f32 1.0, %v125_v46  ;;  %v115_v8 = vadd.f32 1.1283791, %v114_v0 }
  0xaa   :  { %v88_v49 = vmul.f32 %v177_v47, %v86_v38  ;;  %vm93_vm1 = vweird.f32 %v177_v47 }
  0xab   :  { %178 = vrcp.f32 %v126_v50  ;;  %vm94_vm3 = vmor %vm92_vm2, %vm93_vm1  ;;  %v138_v7 = vand.u32 2147483648, %v126_v50  ;;  %v136_v10 = vand.u32 2147483647, %v126_v50  ;;  %vm132_vm6 = vweird.f32 %v126_v50 }
  0xac   :  { %v89_v52 = vsub.f32 1.0, %v88_v49  ;;  %v116_v17 = vmul.f32 %v115_v8, %v218_v15 }
  0xad   :  { %v139_v6 = vor.u32 1.1754944e-38, %v138_v7  ;;  %vm137_vm9 = vcmp.eq.f32.partialorder %v136_v10, 8.507059e+37 }
  0xae   :  { %v90_v55 = vmul.f32 %v177_v47, %v89_v52 }
  0xb0   :  { %v91_v58 = vadd.f32 %v177_v47, %v90_v55 }
  0xb1   :  { %v179_v60 = vpop.eup %178 }
  0xb2   :  { %v95_v62 = vsel %vm94_vm3, %v177_v47, %v91_v58  ;;  %v128_v1 = vmul.f32 %v179_v60, %v126_v50  ;;  %vm133_vm5 = vweird.f32 %v179_v60 }
  0xb3   :  { %v100_v63 = vsel %vm97_vm4, %v99_v59, %v95_v62  ;;  %vm134_vm7 = vmor %vm132_vm6, %vm133_vm5 }
  0xb4   :  { %v101_v2 = vmul.f32 %v100_v63, %v76_v61  ;;  %v129_v3 = vsub.f32 1.0, %v128_v1 }
  0xb6   :  { %v170_v4 = vclamps-f32 %v101_v2, 1.0  ;;  %v130_v9 = vmul.f32 %v179_v60, %v129_v3 }
  0xb8   :  { %v144_v13 = vadd.f32 1.0, %v170_v4  ;;  %v131_v14 = vadd.f32 %v179_v60, %v130_v9 }
  0xba   :  { %v146_v16 = vmul.f32 %v144_v13, %v60_v11  ;;  %v135_v18 = vsel %vm134_vm7, %v179_v60, %v131_v14 }
  0xbb   :  { %v140_v20 = vsel %vm137_vm9, %v139_v6, %v135_v18 }
  0xbc   :  { %v148_v19 = vpack.c.bf16 %v146_v16, %v146_v16  ;;  %v141_v21 = vmul.f32 %v140_v20, %v116_v17 }
  0xbe   :  { %151 = vst.msk [vmem:[%s234_s3] sm:$0xf] %vm150_vm8, %v148_v19  ;;  %v171_v22 = vclamps-f32 %v141_v21, 1.0 }
  0xc0   :  { %v145_v23 = vadd.f32 1.0, %v171_v22 }
  0xc2   :  { %v147_v24 = vmul.f32 %v145_v23, %v61_v5 }
  0xc4   :  { %v149_v25 = vpack.c.bf16 %v147_v24, %v147_v24 }
  0xc6   :  { %152 = vst.msk [vmem:[%s234_s3 + $0x4] sm:$0xf] %vm150_vm8, %v149_v25 }

// kernel: bert_class_forward.17
= control target key start
LH: loop header
LB: loop body
LE: loop exit
PB: predicated region body
PF: predicated region fallthrough
CT: control target
= control target key end

     0   :  { %vm67_vm0 = vcmask 523264   ;;  %vm91_vm1 = vcmask 261120   ;;  %v204_v17 = vmov 32.0   ;;  %vm157_vm7 = vcmask 257024   ;;  %s277_s1 = inlined_call_operand.vmem [shape: bf16[64,32], index: 1, kind: input, shape index: {}]   ;;  %s278_s2 = inlined_call_operand.vmem [shape: f32[1,32], index: 2, kind: input, shape index: {}]   ;;  %s279_s0 = inlined_call_operand.vmem [shape: bf16[16,64], index: 0, kind: input, shape index: {}]   ;;  %s280_s3 = inlined_call_operand.vmem [shape: bf16[16,32], index: 3, kind: input, shape index: {}]   ;;  %s281_s4 = inlined_call_operand.vmem [shape: f32[1,32], index: 4, kind: input, shape index: {}]   ;;  %s282_s5 = inlined_call_operand.vmem [shape: f32[1,32], index: 5, kind: input, shape index: {}]   ;;  %s283_s6 = inlined_call_operand.vmem [shape: bf16[16,32], index: 6, kind: output, shape index: {}]  }
   0x1   :  { %v189_v0 = vld [vmem:[%s277_s1 + $0x18] sm:$0xff]  ;;  %v188_v1 = vld [vmem:[%s277_s1 + $0x10] sm:$0xff]  ;;  %v187_v2 = vld [vmem:[%s277_s1 + $0x8] sm:$0xff]  ;;  %198 = vrcp.f32 %v204_v17 }
   0x2   :  { %75 = vmatpush.bf16.msra.mxu0 %v189_v0  ;;  %v186_v3 = vld [vmem:[%s277_s1] sm:$0xff] }
   0x3   :  { %v185_v4 = vld [vmem:[%s279_s0] sm:$0xff] }
   0x4   :  { %v191_v5 = vld [vmem:[%s280_s3] sm:$0xff]  }
   0x5   :  { %v195_v6 = vld [vmem:[%s278_s2] ss:$0 sm:$0xff]  ;;  %v192_v7 = vunpack.c.l.bf16 %v191_v5  ;;  %v193_v12 = vunpack.c.h.bf16 %v191_v5 }
   0x6   :  { %76 = vmatpush.bf16.msra.mxu0 %v188_v1  ;;  %v196_v48 = vld [vmem:[%s281_s4] ss:$0 sm:$0xff] }
   0x7   :  { %v199_v18 = vpop.eup %198  ;;  %v197_v51 = vld [vmem:[%s282_s5] ss:$0 sm:$0xff] }
   0x8   :  { %v99_v19 = vmul.f32 32.0, %v199_v18  ;;  %vm103_vm2 = vweird.f32 %v199_v18 }
   0xa   :  { %77 = vmatpush.bf16.msra.mxu0 %v187_v2  ;;  %v100_v20 = vsub.f32 1.0, %v99_v19 }
   0xc   :  { %v101_v21 = vmul.f32 %v199_v18, %v100_v20 }
   0xe   :  { %78 = vmatpush.bf16.msra.mxu0 %v186_v3  ;;  %v102_v22 = vadd.f32 %v199_v18, %v101_v21 }
  0x10   :  { %v104_v23 = vsel %vm103_vm2, %v199_v18, %v102_v22 }
  0x11   :  { %184 = vmatmul.msk.bf16.vlgmr.msra.gmra.mxu0 %vm67_vm0, %v185_v4 }
  0x8e   :  { %v80_v8 = vpop.f32.mrf.mxu0 }
  0x8f   :  { %v81_v9 = vadd.f32 %v195_v6, %v80_v8 }
  0x91   :  { %v89_v10 = vadd.f32 %v192_v7, %v81_v9 }
  0x93   :  { %v92_v11 = vsel %vm91_vm1, %v89_v10, 0.0 }
  0x94   :  { %93 = vadd.xlane.f32.xlu0 %v92_v11 }
  0x96   :  { %v82_v13 = vpop.f32.mrf.mxu0 }
  0x97   :  { %v83_v14 = vadd.f32 %v195_v6, %v82_v13 }
  0x99   :  { %v90_v15 = vadd.f32 %v193_v12, %v83_v14 }
  0x9b   :  { %v95_v16 = vsel %vm91_vm1, %v90_v15, 0.0 }
  0x9c   :  { %96 = vadd.xlane.f32.xlu0 %v95_v16 }
 0x107   :  { %v94_v24 = vpop.xlane.xlu0 %93 }
 0x108   :  { %v105_v25 = vmul.f32 %v104_v23, %v94_v24 }
 0x10a   :  { %v107_v26 = vsub.f32 %v89_v10, %v105_v25 }
 0x10c   :  { %v109_v27 = vmul.f32 %v107_v26, %v107_v26 }
 0x10e   :  { %v111_v28 = vsel %vm91_vm1, %v109_v27, 0.0 }
 0x10f   :  { %112 = vadd.xlane.f32.xlu1 %v111_v28  ;;  %v97_v29 = vpop.xlane.xlu0 %96 }
 0x110   :  { %v106_v30 = vmul.f32 %v104_v23, %v97_v29 }
 0x112   :  { %v108_v31 = vsub.f32 %v90_v15, %v106_v30 }
 0x114   :  { %v110_v32 = vmul.f32 %v108_v31, %v108_v31 }
 0x116   :  { %v114_v33 = vsel %vm91_vm1, %v110_v32, 0.0 }
 0x117   :  { %115 = vadd.xlane.f32.xlu1 %v114_v33 }
 0x182   :  { %v113_v34 = vpop.xlane.xlu1 %112 }
 0x183   :  { %v117_v35 = vmul.f32 %v113_v34, %v104_v23 }
 0x185   :  { %v119_v36 = vadd.f32 1e-05, %v117_v35 }
 0x187   :  { %200 = vrsqrt.f32 %v119_v36  ;;  %vm127_vm4 = vweird.f32 %v119_v36 }
 0x18a   :  { %v116_v37 = vpop.xlane.xlu1 %115 }
 0x18b   :  { %v118_v38 = vmul.f32 %v116_v37, %v104_v23 }
 0x18d   :  { %v201_v39 = vpop.eup %200  ;;  %v120_v40 = vadd.f32 1e-05, %v118_v38 }
 0x18e   :  { %v122_v41 = vmul.f32 %v201_v39, %v119_v36  ;;  %vm128_vm3 = vweird.f32 %v201_v39 }
 0x18f   :  { %202 = vrsqrt.f32 %v120_v40  ;;  %vm129_vm5 = vmor %vm127_vm4, %vm128_vm3  ;;  %vm137_vm8 = vweird.f32 %v120_v40 }
 0x190   :  { %v123_v42 = vmul.f32 %v201_v39, %v122_v41 }
 0x192   :  { %v124_v43 = vmul.f32 0.5, %v123_v42 }
 0x194   :  { %v125_v44 = vsub.f32 1.5, %v124_v43 }
 0x195   :  { %v203_v45 = vpop.eup %202 }
 0x196   :  { %v126_v46 = vmul.f32 %v201_v39, %v125_v44  ;;  %v132_v47 = vmul.f32 %v203_v45, %v120_v40  ;;  %vm138_vm6 = vweird.f32 %v203_v45 }
 0x197   :  { %vm139_vm9 = vmor %vm137_vm8, %vm138_vm6 }
 0x198   :  { %v130_v49 = vsel %vm129_vm5, %v201_v39, %v126_v46  ;;  %v133_v50 = vmul.f32 %v203_v45, %v132_v47 }
 0x199   :  { %v141_v52 = vmul.f32 %v130_v49, %v107_v26 }
 0x19a   :  { %v134_v53 = vmul.f32 0.5, %v133_v50 }
 0x19b   :  { %v147_v54 = vmul.f32 %v196_v48, %v141_v52 }
 0x19c   :  { %v135_v55 = vsub.f32 1.5, %v134_v53 }
 0x19d   :  { %v153_v56 = vadd.f32 %v197_v51, %v147_v54 }
 0x19e   :  { %v136_v57 = vmul.f32 %v203_v45, %v135_v55 }
 0x19f   :  { %v155_v58 = vpack.c.bf16 %v153_v56, %v153_v56 }
 0x1a0   :  { %v140_v59 = vsel %vm139_vm9, %v203_v45, %v136_v57 }
 0x1a1   :  { %158 = vst.msk [vmem:[%s283_s6] sm:$0xf] %vm157_vm7, %v155_v58  ;;  %v142_v60 = vmul.f32 %v140_v59, %v108_v31 }
 0x1a3   :  { %v148_v61 = vmul.f32 %v196_v48, %v142_v60 }
 0x1a5   :  { %v154_v62 = vadd.f32 %v197_v51, %v148_v61 }
 0x1a7   :  { %v156_v63 = vpack.c.bf16 %v154_v62, %v154_v62 }
 0x1a9   :  { %159 = vst.msk [vmem:[%s283_s6 + $0x4] sm:$0xf] %vm157_vm7, %v156_v63 }

// kernel: bert_class_forward.23
= control target key start
LH: loop header
LB: loop body
LE: loop exit
PB: predicated region body
PF: predicated region fallthrough
CT: control target
= control target key end

     0   :  { %vm42_vm0 = vcmask 261120   ;;  %s121_s1 = inlined_call_operand.vmem [shape: bf16[32,128], index: 1, kind: input, shape index: {}]   ;;  %s122_s2 = inlined_call_operand.vmem [shape: f32[1,128], index: 2, kind: input, shape index: {}]   ;;  %s123_s0 = inlined_call_operand.vmem [shape: bf16[16,32], index: 0, kind: input, shape index: {}]   ;;  %s124_s3 = inlined_call_operand.vmem [shape: f32[16,128], index: 3, kind: output, shape index: {}]  }
   0x1   :  { %v81_v0 = vld [vmem:[%s121_s1 + $0x8] sm:$0xff]  ;;  %v80_v1 = vld [vmem:[%s121_s1] sm:$0xff] }
   0x2   :  { %52 = vmatpush.bf16.msra.mxu0 %v81_v0  ;;  %v79_v2 = vld [vmem:[%s123_s0] sm:$0xff] }
   0x3   :  { %v82_v3 = vld [vmem:[%s122_s2] ss:$0 sm:$0xff] }
   0x6   :  { %53 = vmatpush.bf16.msra.mxu0 %v80_v1 }
   0x9   :  { %78 = vmatmul.msk.bf16.vlgmr.msra.gmra.mxu0 %vm42_vm0, %v79_v2 }
  0x86   :  { %v55_v4 = vpop.f32.mrf.mxu0 }
  0x87   :  { %v56_v5 = vadd.f32 %v82_v3, %v55_v4 }
  0x89   :  { %60 = vst [vmem:[%s124_s3] sm:$0xff] %v56_v5 }
  0x8e   :  { %v57_v6 = vpop.f32.mrf.mxu0 }
  0x8f   :  { %v58_v7 = vadd.f32 %v82_v3, %v57_v6 }
  0x91   :  { %61 = vst [vmem:[%s124_s3 + $0x8] sm:$0xff] %v58_v7 }

</bundles_post_ra>
